<compile_context>
chip_gen: v6e
topology: v6e:2x2x1
jax: 0.10.0
libtpu: 0.0.40
codegen_flags: <defaults>
</compile_context>

<pallas_src>
import math
import functools

import jax
import jax.numpy as jnp
from jax.experimental import pallas as pl
from jax.experimental.pallas import tpu as pltpu


# 48 MiB scoped VMEM: above the 16/32 MiB defaults, below v7x's 64 MiB physical.
_VMEM_LIMIT = 48 * 1024 * 1024


def _pick_tile(total, max_tile, align):
    """Largest tile <= max_tile that divides `total` and is `align`-aligned.

    Falls back to the full extent (single block) if no aligned divisor exists.
    """
    if total <= max_tile:
        return total
    t = (max_tile // align) * align
    while t >= align:
        if total % t == 0:
            return t
        t -= align
    # TODO(synk): support non-divisible N (e.g. vocab=50257) via padded grids.
    return total


# --------------------------------------------------------------------------- #
# Fused (optional-LN) linear kernel:  out = [LN](x) @ W [+ b] [+ residual]
# --------------------------------------------------------------------------- #

def _fused_linear_kernel(*refs, do_ln, has_bias, has_residual):
    idx = 0
    x_ref = refs[idx]; idx += 1
    if do_ln:
        g_ref = refs[idx]; s_ref = refs[idx + 1]; idx += 2
    w_ref = refs[idx]; idx += 1
    if has_bias:
        b_ref = refs[idx]; idx += 1
    if has_residual:
        r_ref = refs[idx]; idx += 1
    o_ref = refs[idx]

    x = x_ref[...].astype(jnp.float32)
    if do_ln:
        mean = jnp.mean(x, axis=-1, keepdims=True)
        var = jnp.mean((x - mean) ** 2, axis=-1, keepdims=True)   # unbiased=False
        x = (x - mean) * jax.lax.rsqrt(var + jnp.float32(1e-5))
        x = g_ref[...] * x + s_ref[...]

    # bf16 operands into the MXU, f32 accumulation.
    acc = jnp.dot(x.astype(jnp.bfloat16), w_ref[...],
                  preferred_element_type=jnp.float32)
    if has_bias:
        acc = acc + b_ref[...]
    if has_residual:
        acc = acc + r_ref[...]
    o_ref[...] = acc.astype(o_ref.dtype)


def fused_linear(x2d, w, *, bias=None, residual=None,
                 ln_scale=None, ln_shift=None, max_tm=256, max_tn=2048):
    """x2d:(M,K) f32, w:(K,N) bf16 -> (M,N) f32, with optional fused LN/bias/residual."""
    M, K = x2d.shape
    N = w.shape[1]
    TM = _pick_tile(M, max_tm, 8)
    TN = _pick_tile(N, max_tn, 128)
    grid = (M // TM, N // TN)

    do_ln = ln_scale is not None
    has_bias = bias is not None
    has_res = residual is not None

    args = [x2d]
    in_specs = [pl.BlockSpec((TM, K), lambda i, j: (i, 0))]
    if do_ln:
        ln_spec = pl.BlockSpec((1, K), lambda i, j: (0, 0))
        args += [ln_scale.reshape(1, K), ln_shift.reshape(1, K)]
        in_specs += [ln_spec, ln_spec]
    args.append(w)
    in_specs.append(pl.BlockSpec((K, TN), lambda i, j: (0, j)))
    if has_bias:
        args.append(bias.reshape(1, N))
        in_specs.append(pl.BlockSpec((1, TN), lambda i, j: (0, j)))
    if has_res:
        args.append(residual)
        in_specs.append(pl.BlockSpec((TM, TN), lambda i, j: (i, j)))

    flops = 2 * M * K * N
    bytes_accessed = int(
        x2d.size * x2d.dtype.itemsize + w.size * w.dtype.itemsize + M * N * 4
        + (bias.size * 4 if has_bias else 0)
        + (residual.size * 4 if has_res else 0))

    kernel = functools.partial(_fused_linear_kernel, do_ln=do_ln,
                               has_bias=has_bias, has_residual=has_res)
    return pl.pallas_call(
        kernel,
        out_shape=jax.ShapeDtypeStruct((M, N), jnp.float32),
        grid=grid,
        in_specs=in_specs,
        out_specs=pl.BlockSpec((TM, TN), lambda i, j: (i, j)),
        compiler_params=pltpu.CompilerParams(
            dimension_semantics=("parallel", "parallel"),
            vmem_limit_bytes=_VMEM_LIMIT),
        cost_estimate=pl.CostEstimate(flops=flops, transcendentals=0,
                                      bytes_accessed=bytes_accessed),
    )(*args)


# --------------------------------------------------------------------------- #
# Fused LN2 + FeedForward + residual kernel
# --------------------------------------------------------------------------- #

def _ln_ffn_kernel(x_ref, g_ref, s_ref, w1_ref, b1_ref, w2_ref, b2_ref, o_ref):
    x = x_ref[...].astype(jnp.float32)
    mean = jnp.mean(x, axis=-1, keepdims=True)
    var = jnp.mean((x - mean) ** 2, axis=-1, keepdims=True)
    xn = (x - mean) * jax.lax.rsqrt(var + jnp.float32(1e-5))
    xn = g_ref[...] * xn + s_ref[...]

    h = jnp.dot(xn.astype(jnp.bfloat16), w1_ref[...],
                preferred_element_type=jnp.float32) + b1_ref[...]
    c = jnp.float32(math.sqrt(2.0 / math.pi))
    h = 0.5 * h * (1.0 + jnp.tanh(c * (h + 0.044715 * h * h * h)))   # GPT2 GELU
    o = jnp.dot(h.astype(jnp.bfloat16), w2_ref[...],
                preferred_element_type=jnp.float32) + b2_ref[...]
    o_ref[...] = (o + x).astype(o_ref.dtype)      # residual = pre-LN input (same tile)


def ln_ffn_residual(x2d, ln_scale, ln_shift, ffp, max_tm=256):
    """out = x + Linear2(GELU(Linear1(LayerNorm(x)))), tiled over rows."""
    M, D = x2d.shape
    Hh = ffp["w1"].shape[1]
    # NOTE(v7x): w1/w2 stay resident (constant index_map); shrink max_tm if the
    # double-buffered working set approaches the 64 MiB VMEM of v7x.
    TM = _pick_tile(M, max_tm, 8)
    grid = (M // TM,)

    flops = 4 * M * D * Hh
    bytes_accessed = int(x2d.size * 4 + ffp["w1"].size * 2 + ffp["w2"].size * 2
                         + (Hh + D) * 4 + M * D * 4)

    return pl.pallas_call(
        _ln_ffn_kernel,
        out_shape=jax.ShapeDtypeStruct((M, D), jnp.float32),
        grid=grid,
        in_specs=[
            pl.BlockSpec((TM, D), lambda i: (i, 0)),
            pl.BlockSpec((1, D), lambda i: (0, 0)),
            pl.BlockSpec((1, D), lambda i: (0, 0)),
            pl.BlockSpec((D, Hh), lambda i: (0, 0)),
            pl.BlockSpec((1, Hh), lambda i: (0, 0)),
            pl.BlockSpec((Hh, D), lambda i: (0, 0)),
            pl.BlockSpec((1, D), lambda i: (0, 0)),
        ],
        out_specs=pl.BlockSpec((TM, D), lambda i: (i, 0)),
        compiler_params=pltpu.CompilerParams(
            dimension_semantics=("parallel",),
            vmem_limit_bytes=_VMEM_LIMIT),
        cost_estimate=pl.CostEstimate(flops=flops, transcendentals=M * Hh,
                                      bytes_accessed=bytes_accessed),
    )(x2d, ln_scale.reshape(1, D), ln_shift.reshape(1, D),
      ffp["w1"], ffp["b1"].reshape(1, Hh), ffp["w2"], ffp["b2"].reshape(1, D))


# --------------------------------------------------------------------------- #
# Multi-head attention kernels (all heads per grid step; grid over batch)
# --------------------------------------------------------------------------- #

def _mha_heads(q_slab, k_slab, v_slab, H, Hd, causal, scale):
    """q_slab:(Tq,D) k/v_slab:(Tk,D) f32 -> (Tq,D) context in natural layout."""
    Tq = q_slab.shape[0]
    Tk = k_slab.shape[0]
    if causal:
        qi = jax.lax.broadcasted_iota(jnp.int32, (Tq, Tk), 0)
        ki = jax.lax.broadcasted_iota(jnp.int32, (Tq, Tk), 1)
        # finite mask value (avoids -inf NaN hazards if Tk ever gets tiled)
        mask_bias = jnp.where(ki <= qi, jnp.float32(0.0), jnp.float32(-1e30))

    dn_qk = (((1,), (1,)), ((), ()))   # q @ k^T  (contract head_dim)
    dn_pv = (((1,), (0,)), ((), ()))   # p @ v
    outs = []
    # TODO(synk): for long contexts, tile Tk with an online-softmax accumulator
    # (pl.when init/finalize) instead of materializing the full (Tq, Tk) scores.
    for h in range(H):                 # static unroll; heads share the grid step
        sl = slice(h * Hd, (h + 1) * Hd)
        qh = q_slab[:, sl].astype(jnp.bfloat16)
        kh = k_slab[:, sl].astype(jnp.bfloat16)
        vh = v_slab[:, sl].astype(jnp.bfloat16)
        s = jax.lax.dot_general(qh, kh, dn_qk,
                                preferred_element_type=jnp.float32) * scale
        if causal:
            s = s + mask_bias
        m = jnp.max(s, axis=-1, keepdims=True)
        p = jnp.exp(s - m)
        p = p * pl.reciprocal(jnp.sum(p, axis=-1, keepdims=True), approx=True)
        outs.append(jax.lax.dot_general(p.astype(jnp.bfloat16), vh, dn_pv,
                                        preferred_element_type=jnp.float32))
    return jnp.concatenate(outs, axis=-1)      # (Tq, H*Hd), lane-dense store


def _self_attn_kernel(qkv_ref, o_ref, *, H, Hd, scale):
    qkv = qkv_ref[0]                      # (T, 3D)
    D = H * Hd
    q = qkv[:, :D]
    k = qkv[:, D:2 * D]
    v = qkv[:, 2 * D:3 * D]
    o_ref[0] = _mha_heads(q, k, v, H, Hd, causal=True, scale=scale).astype(o_ref.dtype)


def _cross_attn_kernel(q_ref, kv_ref, o_ref, *, H, Hd, scale):
    q = q_ref[0]                          # (Tq, D)
    kv = kv_ref[0]                        # (Tk, 2D)
    D = H * Hd
    k = kv[:, :D]
    v = kv[:, D:2 * D]
    o_ref[0] = _mha_heads(q, k, v, H, Hd, causal=False, scale=scale).astype(o_ref.dtype)


def self_attention_op(qkv_b, H, Hd):
    """qkv_b:(B,T,3D) -> (B,T,D) causal SDPA over all heads per grid step."""
    B, T, threeD = qkv_b.shape
    D = H * Hd
    scale = 1.0 / math.sqrt(Hd)
    return pl.pallas_call(
        functools.partial(_self_attn_kernel, H=H, Hd=Hd, scale=scale),
        out_shape=jax.ShapeDtypeStruct((B, T, D), jnp.float32),
        grid=(B,),
        in_specs=[pl.BlockSpec((1, T, threeD), lambda b: (b, 0, 0))],
        out_specs=pl.BlockSpec((1, T, D), lambda b: (b, 0, 0)),
        compiler_params=pltpu.CompilerParams(
            dimension_semantics=("parallel",),
            vmem_limit_bytes=_VMEM_LIMIT),
    )(qkv_b)


def cross_attention_op(q_b, kv_b, H, Hd):
    """q_b:(B,Tq,D), kv_b:(B,Tk,2D) -> (B,Tq,D) non-causal SDPA (natural layout)."""
    B, Tq, D = q_b.shape
    Tk = kv_b.shape[1]
    scale = 1.0 / math.sqrt(Hd)
    return pl.pallas_call(
        functools.partial(_cross_attn_kernel, H=H, Hd=Hd, scale=scale),
        out_shape=jax.ShapeDtypeStruct((B, Tq, D), jnp.float32),
        grid=(B,),
        in_specs=[pl.BlockSpec((1, Tq, D), lambda b: (b, 0, 0)),
                  pl.BlockSpec((1, Tk, 2 * D), lambda b: (b, 0, 0))],
        out_specs=pl.BlockSpec((1, Tq, D), lambda b: (b, 0, 0)),
        compiler_params=pltpu.CompilerParams(
            dimension_semantics=("parallel",),
            vmem_limit_bytes=_VMEM_LIMIT),
    )(q_b, kv_b)


# --------------------------------------------------------------------------- #
# Transformer blocks (all activations carried as flat (B*T, D) f32 slabs)
# --------------------------------------------------------------------------- #

def transformer_block(x2d, bp, H, Hd, B, T):
    D = H * Hd
    # self-attention sub-block: LN1 + QKV fused; proj + bias + residual fused
    qkv = fused_linear(x2d, bp["att"]["wqkv"],
                       ln_scale=bp["n1_scale"], ln_shift=bp["n1_shift"])
    ctx = self_attention_op(qkv.reshape(B, T, 3 * D), H, Hd).reshape(B * T, D)
    x2d = fused_linear(ctx, bp["att"]["wproj"],
                       bias=bp["att"]["bproj"], residual=x2d)
    # FFN sub-block: LN2 + FFN + residual in a single kernel
    x2d = ln_ffn_residual(x2d, bp["n2_scale"], bp["n2_shift"], bp["ff"])
    return x2d


def cross_transformer_block(x2d, xkv2d, bp, H, Hd, B, Tq, Tk):
    D = H * Hd
    # self-attention sub-block
    qkv = fused_linear(x2d, bp["att"]["wqkv"],
                       ln_scale=bp["n1_scale"], ln_shift=bp["n1_shift"])
    ctx = self_attention_op(qkv.reshape(B, Tq, 3 * D), H, Hd).reshape(B * Tq, D)
    x2d = fused_linear(ctx, bp["att"]["wproj"],
                       bias=bp["att"]["bproj"], residual=x2d)

    # cross-attention sub-block (no LayerNorm before it in the reference model)
    q = fused_linear(x2d, bp["x_att"]["wq"])
    kv = fused_linear(xkv2d, bp["x_att"]["wkv"])
    xctx = cross_attention_op(q.reshape(B, Tq, D), kv.reshape(B, Tk, 2 * D), H, Hd)
    # Faithful to torch's `.transpose(1, -1).contiguous().view(B, Tq, D)` which
    # flattens (head_dim, tokens, heads); kept for semantic parity with the
    # reference model even though it mixes the token axis when head_dim != Tq.
    xctx = xctx.reshape(B, Tq, H, Hd)
    xctx = jnp.transpose(xctx, (0, 3, 1, 2)).reshape(B * Tq, D)
    x2d = fused_linear(xctx, bp["x_att"]["wproj"],
                       bias=bp["x_att"]["bproj"], residual=x2d)

    # FFN sub-block
    x2d = ln_ffn_residual(x2d, bp["n2_scale"], bp["n2_shift"], bp["ff"])
    return x2d


def cross_attention_gpt2_forward(params, token_ids, vision_inputs, cfg):
    D, H = cfg["emb_dim"], cfg["n_heads"]
    Hd = D // H
    ctx_len, x_ratio = cfg["context_length"], cfg["x_att_ratio"]

    token_ids = token_ids[:, -ctx_len:]
    B, T = token_ids.shape
    Tk = vision_inputs.shape[1]

    # Embedding gather + positional add kept as plain-JAX glue (no tiled hot loop).
    tok = jnp.take(params["tok_emb"], token_ids, axis=0)          # (B, T, D)
    pos = params["pos_emb"][:T]
    x2d = (tok + pos[None, :, :]).reshape(B * T, D)               # drop_emb = identity
    xkv2d = vision_inputs.reshape(B * Tk, D).astype(jnp.float32)

    for i, bp in enumerate(params["blocks"]):
        if i % x_ratio == 0:
            x2d = cross_transformer_block(x2d, xkv2d, bp, H, Hd, B, T, Tk)
        else:
            x2d = transformer_block(x2d, bp, H, Hd, B, T)

    # final LayerNorm fused into the vocab projection (N-tiled when vocab is big)
    logits = fused_linear(x2d, params["out_head"],
                          ln_scale=params["fn_scale"], ln_shift=params["fn_shift"])
    return logits.reshape(B, T, -1)


# --------------------------------------------------------------------------- #
# Parameter init (matmul weights stored bf16 for MXU / HBM; rest f32)
# --------------------------------------------------------------------------- #

def init_params(key, cfg, vocab_size):
    D = cfg["emb_dim"]
    n_layers, x_ratio = cfg["n_layers"], cfg["x_att_ratio"]
    keys = iter(jax.random.split(key, 512))

    def w(shape, dtype=jnp.bfloat16, scale=0.02):
        return (scale * jax.random.normal(next(keys), shape)).astype(dtype)

    def att_params():
        return {"wqkv": w((D, 3 * D)), "wproj": w((D, D)),
                "bproj": w((D,), jnp.float32)}

    def xatt_params():
        return {"wq": w((D, D)), "wkv": w((D, 2 * D)), "wproj": w((D, D)),
                "bproj": w((D,), jnp.float32)}

    def ff_params():
        return {"w1": w((D, 4 * D)), "b1": w((4 * D,), jnp.float32),
                "w2": w((4 * D, D)), "b2": w((D,), jnp.float32)}

    blocks = []
    for i in range(n_layers):
        bp = {
            "n1_scale": jnp.ones((D,), jnp.float32),
            "n1_shift": jnp.zeros((D,), jnp.float32),
            "n2_scale": jnp.ones((D,), jnp.float32),
            "n2_shift": jnp.zeros((D,), jnp.float32),
            "att": att_params(),
            "ff": ff_params(),
        }
        if i % x_ratio == 0:
            bp["x_att"] = xatt_params()
        blocks.append(bp)

    return {
        "tok_emb": w((vocab_size, D), jnp.float32),
        "pos_emb": w((cfg["context_length"], D), jnp.float32),
        "blocks": blocks,
        "fn_scale": jnp.ones((D,), jnp.float32),
        "fn_shift": jnp.zeros((D,), jnp.float32),
        "out_head": w((D, vocab_size)),
    }


# --------------------------------------------------------------------------- #
# main
# --------------------------------------------------------------------------- #

if __name__ == "__main__":
    cfg = dict(
        emb_dim=64,
        context_length=16,
        n_heads=4,
        n_layers=4,
        drop_rate=0.1,      # identity in eval mode
        qkv_bias=False,
        x_att_ratio=4,
    )
    vocab_size = 128
    B, T, Tkv = 2, 8, 8

    key = jax.random.PRNGKey(0)
    k_param, k_tok, k_vis = jax.random.split(key, 3)

    params = init_params(k_param, cfg, vocab_size)
    token_ids = jax.random.randint(k_tok, (B, T), 0, vocab_size, dtype=jnp.int32)
    vision_inputs = (0.1 * jax.random.normal(k_vis, (B, Tkv, cfg["emb_dim"]))).astype(jnp.float32)

    fwd = jax.jit(functools.partial(cross_attention_gpt2_forward, cfg=cfg))
    logits = jax.block_until_ready(fwd(params, token_ids, vision_inputs))

    assert logits.shape == (B, T, vocab_size), logits.shape
    assert bool(jnp.all(jnp.isfinite(logits)))
    print("KERNEL_OK")
</pallas_src>

<mosaic_0001>
module attributes {stable_mosaic.version = 11 : i64} {
  func.func @_fused_linear_kernel(%arg0: i32, %arg1: i32, %arg2: memref<16x64xf32, #tpu.memory_space<vmem>>, %arg3: memref<64x64xbf16, #tpu.memory_space<vmem>>, %arg4: memref<1x64xf32, #tpu.memory_space<vmem>>, %arg5: memref<16x64xf32, #tpu.memory_space<vmem>>, %arg6: memref<16x64xf32, #tpu.memory_space<vmem>>) attributes {dimension_semantics = [#tpu.dimension_semantics<parallel>, #tpu.dimension_semantics<parallel>], iteration_bounds = array<i64: 1, 1>, scalar_prefetch = 0 : i64, scratch_operands = 0 : i64, tpu.core_type = #tpu.core_type<tc>, window_params = [{transform_indices = @transform_0, window_bounds = array<i64: 16, 64>}, {transform_indices = @transform_1, window_bounds = array<i64: 64, 64>}, {transform_indices = @transform_2, window_bounds = array<i64: 1, 64>}, {transform_indices = @transform_3, window_bounds = array<i64: 16, 64>}, {transform_indices = @transform_4, window_bounds = array<i64: 16, 64>}]} {
    %c0 = arith.constant 0 : index
    %c0_0 = arith.constant 0 : index
    %0 = vector.load %arg2[%c0, %c0_0] : memref<16x64xf32, #tpu.memory_space<vmem>>, vector<16x64xf32>
    %1 = arith.truncf %0 : vector<16x64xf32> to vector<16x64xbf16>
    %c0_1 = arith.constant 0 : index
    %c0_2 = arith.constant 0 : index
    %2 = vector.load %arg3[%c0_1, %c0_2] : memref<64x64xbf16, #tpu.memory_space<vmem>>, vector<64x64xbf16>
    %cst = arith.constant dense<0.000000e+00> : vector<16x64xf32>
    %3 = tpu.matmul %1, %2, %cst {dimension_numbers = #tpu.dot_dimension_numbers<[1], [0], [0], [1], [0, 0, 1, 1], [], []>} : vector<16x64xbf16>, vector<64x64xbf16>, vector<16x64xf32> -> vector<16x64xf32>
    %c0_3 = arith.constant 0 : index
    %c0_4 = arith.constant 0 : index
    %4 = vector.load %arg4[%c0_3, %c0_4] : memref<1x64xf32, #tpu.memory_space<vmem>>, vector<1x64xf32>
    %5 = vector.broadcast %4 : vector<1x64xf32> to vector<16x64xf32>
    %6 = arith.addf %3, %5 : vector<16x64xf32>
    %c0_5 = arith.constant 0 : index
    %c0_6 = arith.constant 0 : index
    %7 = vector.load %arg5[%c0_5, %c0_6] : memref<16x64xf32, #tpu.memory_space<vmem>>, vector<16x64xf32>
    %8 = arith.addf %6, %7 : vector<16x64xf32>
    %c0_7 = arith.constant 0 : index
    %c0_8 = arith.constant 0 : index
    %9 = vector.load %arg6[%c0_7, %c0_8] : memref<16x64xf32, #tpu.memory_space<vmem>>, vector<16x64xf32>
    tpu.vector_store %arg6[%c0_7, %c0_8], %8 {strides = array<i32>} : memref<16x64xf32, #tpu.memory_space<vmem>>, vector<16x64xf32>,
    return
  }
  func.func @transform_0(%arg0: i32, %arg1: i32) -> (i32, i32) {
    %c0_i32 = arith.constant 0 : i32
    %c0_i32_0 = arith.constant 0 : i32
    return %arg0, %c0_i32 : i32, i32
  }
  func.func @transform_1(%arg0: i32, %arg1: i32) -> (i32, i32) {
    %c0_i32 = arith.constant 0 : i32
    %c0_i32_0 = arith.constant 0 : i32
    return %c0_i32, %arg1 : i32, i32
  }
  func.func @transform_2(%arg0: i32, %arg1: i32) -> (i32, i32) {
    %c0_i32 = arith.constant 0 : i32
    %c0_i32_0 = arith.constant 0 : i32
    return %c0_i32, %arg1 : i32, i32
  }
  func.func @transform_3(%arg0: i32, %arg1: i32) -> (i32, i32) {
    %c0_i32 = arith.constant 0 : i32
    return %arg0, %arg1 : i32, i32
  }
  func.func @transform_4(%arg0: i32, %arg1: i32) -> (i32, i32) {
    %c0_i32 = arith.constant 0 : i32
    return %arg0, %arg1 : i32, i32
  }
}

module attributes {stable_mosaic.version = 11 : i64} {
  func.func @_fused_linear_kernel(%arg0: i32, %arg1: i32, %arg2: memref<16x64xf32, #tpu.memory_space<vmem>>, %arg3: memref<1x64xf32, #tpu.memory_space<vmem>>, %arg4: memref<1x64xf32, #tpu.memory_space<vmem>>, %arg5: memref<64x192xbf16, #tpu.memory_space<vmem>>, %arg6: memref<16x192xf32, #tpu.memory_space<vmem>>) attributes {dimension_semantics = [#tpu.dimension_semantics<parallel>, #tpu.dimension_semantics<parallel>], iteration_bounds = array<i64: 1, 1>, scalar_prefetch = 0 : i64, scratch_operands = 0 : i64, tpu.core_type = #tpu.core_type<tc>, window_params = [{transform_indices = @transform_0, window_bounds = array<i64: 16, 64>}, {pipeline_mode = #tpu.pipeline_mode<synchronous>, transform_indices = @transform_1, window_bounds = array<i64: 1, 64>}, {pipeline_mode = #tpu.pipeline_mode<synchronous>, transform_indices = @transform_2, window_bounds = array<i64: 1, 64>}, {transform_indices = @transform_3, window_bounds = array<i64: 64, 192>}, {transform_indices = @transform_4, window_bounds = array<i64: 16, 192>}]} {
    %c0 = arith.constant 0 : index
    %c0_0 = arith.constant 0 : index
    %0 = vector.load %arg2[%c0, %c0_0] : memref<16x64xf32, #tpu.memory_space<vmem>>, vector<16x64xf32>
    %cst = arith.constant dense<0.000000e+00> : vector<16xf32>
    %1 = vector.multi_reduction <add>, %0, %cst [1] : vector<16x64xf32> to vector<16xf32>
    %2 = vector.shape_cast %1 : vector<16xf32> to vector<16x1xf32>
    %cst_1 = arith.constant 6.400000e+01 : f32
    %3 = vector.broadcast %cst_1 : f32 to vector<16x1xf32>
    %4 = arith.divf %2, %3 : vector<16x1xf32>
    %5 = vector.broadcast %4 : vector<16x1xf32> to vector<16x64xf32>
    %6 = arith.subf %0, %5 : vector<16x64xf32>
    %7 = arith.mulf %6, %6 : vector<16x64xf32>
    %cst_2 = arith.constant dense<0.000000e+00> : vector<16xf32>
    %8 = vector.multi_reduction <add>, %7, %cst_2 [1] : vector<16x64xf32> to vector<16xf32>
    %9 = vector.shape_cast %8 : vector<16xf32> to vector<16x1xf32>
    %cst_3 = arith.constant 6.400000e+01 : f32
    %10 = vector.broadcast %cst_3 : f32 to vector<16x1xf32>
    %11 = arith.divf %9, %10 : vector<16x1xf32>
    %12 = vector.broadcast %4 : vector<16x1xf32> to vector<16x64xf32>
    %13 = arith.subf %0, %12 : vector<16x64xf32>
    %cst_4 = arith.constant 9.99999974E-6 : f32
    %14 = vector.broadcast %cst_4 : f32 to vector<16x1xf32>
    %15 = arith.addf %11, %14 : vector<16x1xf32>
    %16 = math.rsqrt %15 : vector<16x1xf32>
    %17 = vector.broadcast %16 : vector<16x1xf32> to vector<16x64xf32>
    %18 = arith.mulf %13, %17 : vector<16x64xf32>
    %c0_5 = arith.constant 0 : index
    %c0_6 = arith.constant 0 : index
    %19 = vector.load %arg3[%c0_5, %c0_6] : memref<1x64xf32, #tpu.memory_space<vmem>>, vector<1x64xf32>
    %20 = vector.broadcast %19 : vector<1x64xf32> to vector<16x64xf32>
    %21 = arith.mulf %20, %18 : vector<16x64xf32>
    %c0_7 = arith.constant 0 : index
    %c0_8 = arith.constant 0 : index
    %22 = vector.load %arg4[%c0_7, %c0_8] : memref<1x64xf32, #tpu.memory_space<vmem>>, vector<1x64xf32>
    %23 = vector.broadcast %22 : vector<1x64xf32> to vector<16x64xf32>
    %24 = arith.addf %21, %23 : vector<16x64xf32>
    %25 = arith.truncf %24 : vector<16x64xf32> to vector<16x64xbf16>
    %c0_9 = arith.constant 0 : index
    %c0_10 = arith.constant 0 : index
    %26 = vector.load %arg5[%c0_9, %c0_10] : memref<64x192xbf16, #tpu.memory_space<vmem>>, vector<64x192xbf16>
    %cst_11 = arith.constant dense<0.000000e+00> : vector<16x192xf32>
    %27 = tpu.matmul %25, %26, %cst_11 {dimension_numbers = #tpu.dot_dimension_numbers<[1], [0], [0], [1], [0, 0, 1, 1], [], []>} : vector<16x64xbf16>, vector<64x192xbf16>, vector<16x192xf32> -> vector<16x192xf32>
    %c0_12 = arith.constant 0 : index
    %c0_13 = arith.constant 0 : index
    %28 = vector.load %arg6[%c0_12, %c0_13] : memref<16x192xf32, #tpu.memory_space<vmem>>, vector<16x192xf32>
    tpu.vector_store %arg6[%c0_12, %c0_13], %27 {strides = array<i32>} : memref<16x192xf32, #tpu.memory_space<vmem>>, vector<16x192xf32>,
    return
  }
  func.func @transform_0(%arg0: i32, %arg1: i32) -> (i32, i32) {
    %c0_i32 = arith.constant 0 : i32
    %c0_i32_0 = arith.constant 0 : i32
    return %arg0, %c0_i32 : i32, i32
  }
  func.func @transform_1(%arg0: i32, %arg1: i32) -> (i32, i32) {
    %c0_i32 = arith.constant 0 : i32
    %c0_i32_0 = arith.constant 0 : i32
    %c0_i32_1 = arith.constant 0 : i32
    return %c0_i32, %c0_i32_0 : i32, i32
  }
  func.func @transform_2(%arg0: i32, %arg1: i32) -> (i32, i32) {
    %c0_i32 = arith.constant 0 : i32
    %c0_i32_0 = arith.constant 0 : i32
    %c0_i32_1 = arith.constant 0 : i32
    return %c0_i32, %c0_i32_0 : i32, i32
  }
  func.func @transform_3(%arg0: i32, %arg1: i32) -> (i32, i32) {
    %c0_i32 = arith.constant 0 : i32
    %c0_i32_0 = arith.constant 0 : i32
    return %c0_i32, %arg1 : i32, i32
  }
  func.func @transform_4(%arg0: i32, %arg1: i32) -> (i32, i32) {
    %c0_i32 = arith.constant 0 : i32
    return %arg0, %arg1 : i32, i32
  }
}

module attributes {stable_mosaic.version = 11 : i64} {
  func.func @_self_attn_kernel(%arg0: i32, %arg1: memref<1x8x192xf32, #tpu.memory_space<vmem>>, %arg2: memref<1x8x64xf32, #tpu.memory_space<vmem>>) attributes {dimension_semantics = [#tpu.dimension_semantics<parallel>], iteration_bounds = array<i64: 2>, scalar_prefetch = 0 : i64, scratch_operands = 0 : i64, tpu.core_type = #tpu.core_type<tc>, window_params = [{transform_indices = @transform_0, window_bounds = array<i64: 1, 8, 192>}, {transform_indices = @transform_1, window_bounds = array<i64: 1, 8, 64>}]} {
    %c0 = arith.constant 0 : index
    %c0_0 = arith.constant 0 : index
    %c0_1 = arith.constant 0 : index
    %0 = vector.load %arg1[%c0, %c0_0, %c0_1] : memref<1x8x192xf32, #tpu.memory_space<vmem>>, vector<1x8x192xf32>
    %1 = vector.shape_cast %0 : vector<1x8x192xf32> to vector<8x192xf32>
    %2 = vector.extract_strided_slice %1 {offsets = [0, 0], sizes = [8, 64], strides = [1, 1]} : vector<8x192xf32> to vector<8x64xf32>
    %3 = vector.extract_strided_slice %1 {offsets = [0, 64], sizes = [8, 64], strides = [1, 1]} : vector<8x192xf32> to vector<8x64xf32>
    %4 = vector.extract_strided_slice %1 {offsets = [0, 128], sizes = [8, 64], strides = [1, 1]} : vector<8x192xf32> to vector<8x64xf32>
    %5 = tpu.iota {dimensions = array<i32: 0>} : vector<8x8xi32>
    %6 = tpu.iota {dimensions = array<i32: 1>} : vector<8x8xi32>
    %7 = arith.cmpi sle, %6, %5 : vector<8x8xi32>
    %cst = arith.constant 0.000000e+00 : f32
    %cst_2 = arith.constant -1.000000e+30 : f32
    %8 = vector.broadcast %cst : f32 to vector<8x8xf32>
    %9 = vector.broadcast %cst_2 : f32 to vector<8x8xf32>
    %10 = arith.select %7, %8, %9 : vector<8x8xi1>, vector<8x8xf32>
    %11 = vector.extract_strided_slice %2 {offsets = [0, 0], sizes = [8, 16], strides = [1, 1]} : vector<8x64xf32> to vector<8x16xf32>
    %12 = arith.truncf %11 : vector<8x16xf32> to vector<8x16xbf16>
    %13 = vector.extract_strided_slice %3 {offsets = [0, 0], sizes = [8, 16], strides = [1, 1]} : vector<8x64xf32> to vector<8x16xf32>
    %14 = arith.truncf %13 : vector<8x16xf32> to vector<8x16xbf16>
    %15 = vector.extract_strided_slice %4 {offsets = [0, 0], sizes = [8, 16], strides = [1, 1]} : vector<8x64xf32> to vector<8x16xf32>
    %16 = arith.truncf %15 : vector<8x16xf32> to vector<8x16xbf16>
    %cst_3 = arith.constant dense<0.000000e+00> : vector<8x8xf32>
    %17 = tpu.matmul %12, %14, %cst_3 {dimension_numbers = #tpu.dot_dimension_numbers<[1], [1], [0], [0], [0, 0, 1, 0], [], []>} : vector<8x16xbf16>, vector<8x16xbf16>, vector<8x8xf32> -> vector<8x8xf32>
    %cst_4 = arith.constant 2.500000e-01 : f32
    %18 = vector.broadcast %cst_4 : f32 to vector<8x8xf32>
    %19 = arith.mulf %17, %18 : vector<8x8xf32>
    %20 = arith.addf %19, %10 : vector<8x8xf32>
    %cst_5 = arith.constant dense<0xFF800000> : vector<8xf32>
    %21 = vector.multi_reduction <maximumf>, %20, %cst_5 [1] : vector<8x8xf32> to vector<8xf32>
    %22 = vector.shape_cast %21 : vector<8xf32> to vector<8x1xf32>
    %23 = vector.broadcast %22 : vector<8x1xf32> to vector<8x8xf32>
    %24 = arith.subf %20, %23 : vector<8x8xf32>
    %25 = math.exp %24 : vector<8x8xf32>
    %cst_6 = arith.constant dense<0.000000e+00> : vector<8xf32>
    %26 = vector.multi_reduction <add>, %25, %cst_6 [1] : vector<8x8xf32> to vector<8xf32>
    %27 = vector.shape_cast %26 : vector<8xf32> to vector<8x1xf32>
    %28 = tpu.reciprocal %27 {approx = true} : vector<8x1xf32> -> vector<8x1xf32>
    %29 = vector.broadcast %28 : vector<8x1xf32> to vector<8x8xf32>
    %30 = arith.mulf %25, %29 : vector<8x8xf32>
    %31 = arith.truncf %30 : vector<8x8xf32> to vector<8x8xbf16>
    %cst_7 = arith.constant dense<0.000000e+00> : vector<8x16xf32>
    %32 = tpu.matmul %31, %16, %cst_7 {dimension_numbers = #tpu.dot_dimension_numbers<[1], [0], [0], [1], [0, 0, 1, 1], [], []>} : vector<8x8xbf16>, vector<8x16xbf16>, vector<8x16xf32> -> vector<8x16xf32>
    %33 = vector.extract_strided_slice %2 {offsets = [0, 16], sizes = [8, 16], strides = [1, 1]} : vector<8x64xf32> to vector<8x16xf32>
    %34 = arith.truncf %33 : vector<8x16xf32> to vector<8x16xbf16>
    %35 = vector.extract_strided_slice %3 {offsets = [0, 16], sizes = [8, 16], strides = [1, 1]} : vector<8x64xf32> to vector<8x16xf32>
    %36 = arith.truncf %35 : vector<8x16xf32> to vector<8x16xbf16>
    %37 = vector.extract_strided_slice %4 {offsets = [0, 16], sizes = [8, 16], strides = [1, 1]} : vector<8x64xf32> to vector<8x16xf32>
    %38 = arith.truncf %37 : vector<8x16xf32> to vector<8x16xbf16>
    %cst_8 = arith.constant dense<0.000000e+00> : vector<8x8xf32>
    %39 = tpu.matmul %34, %36, %cst_8 {dimension_numbers = #tpu.dot_dimension_numbers<[1], [1], [0], [0], [0, 0, 1, 0], [], []>} : vector<8x16xbf16>, vector<8x16xbf16>, vector<8x8xf32> -> vector<8x8xf32>
    %cst_9 = arith.constant 2.500000e-01 : f32
    %40 = vector.broadcast %cst_9 : f32 to vector<8x8xf32>
    %41 = arith.mulf %39, %40 : vector<8x8xf32>
    %42 = arith.addf %41, %10 : vector<8x8xf32>
    %cst_10 = arith.constant dense<0xFF800000> : vector<8xf32>
    %43 = vector.multi_reduction <maximumf>, %42, %cst_10 [1] : vector<8x8xf32> to vector<8xf32>
    %44 = vector.shape_cast %43 : vector<8xf32> to vector<8x1xf32>
    %45 = vector.broadcast %44 : vector<8x1xf32> to vector<8x8xf32>
    %46 = arith.subf %42, %45 : vector<8x8xf32>
    %47 = math.exp %46 : vector<8x8xf32>
    %cst_11 = arith.constant dense<0.000000e+00> : vector<8xf32>
    %48 = vector.multi_reduction <add>, %47, %cst_11 [1] : vector<8x8xf32> to vector<8xf32>
    %49 = vector.shape_cast %48 : vector<8xf32> to vector<8x1xf32>
    %50 = tpu.reciprocal %49 {approx = true} : vector<8x1xf32> -> vector<8x1xf32>
    %51 = vector.broadcast %50 : vector<8x1xf32> to vector<8x8xf32>
    %52 = arith.mulf %47, %51 : vector<8x8xf32>
    %53 = arith.truncf %52 : vector<8x8xf32> to vector<8x8xbf16>
    %cst_12 = arith.constant dense<0.000000e+00> : vector<8x16xf32>
    %54 = tpu.matmul %53, %38, %cst_12 {dimension_numbers = #tpu.dot_dimension_numbers<[1], [0], [0], [1], [0, 0, 1, 1], [], []>} : vector<8x8xbf16>, vector<8x16xbf16>, vector<8x16xf32> -> vector<8x16xf32>
    %55 = vector.extract_strided_slice %2 {offsets = [0, 32], sizes = [8, 16], strides = [1, 1]} : vector<8x64xf32> to vector<8x16xf32>
    %56 = arith.truncf %55 : vector<8x16xf32> to vector<8x16xbf16>
    %57 = vector.extract_strided_slice %3 {offsets = [0, 32], sizes = [8, 16], strides = [1, 1]} : vector<8x64xf32> to vector<8x16xf32>
    %58 = arith.truncf %57 : vector<8x16xf32> to vector<8x16xbf16>
    %59 = vector.extract_strided_slice %4 {offsets = [0, 32], sizes = [8, 16], strides = [1, 1]} : vector<8x64xf32> to vector<8x16xf32>
    %60 = arith.truncf %59 : vector<8x16xf32> to vector<8x16xbf16>
    %cst_13 = arith.constant dense<0.000000e+00> : vector<8x8xf32>
    %61 = tpu.matmul %56, %58, %cst_13 {dimension_numbers = #tpu.dot_dimension_numbers<[1], [1], [0], [0], [0, 0, 1, 0], [], []>} : vector<8x16xbf16>, vector<8x16xbf16>, vector<8x8xf32> -> vector<8x8xf32>
    %cst_14 = arith.constant 2.500000e-01 : f32
    %62 = vector.broadcast %cst_14 : f32 to vector<8x8xf32>
    %63 = arith.mulf %61, %62 : vector<8x8xf32>
    %64 = arith.addf %63, %10 : vector<8x8xf32>
    %cst_15 = arith.constant dense<0xFF800000> : vector<8xf32>
    %65 = vector.multi_reduction <maximumf>, %64, %cst_15 [1] : vector<8x8xf32> to vector<8xf32>
    %66 = vector.shape_cast %65 : vector<8xf32> to vector<8x1xf32>
    %67 = vector.broadcast %66 : vector<8x1xf32> to vector<8x8xf32>
    %68 = arith.subf %64, %67 : vector<8x8xf32>
    %69 = math.exp %68 : vector<8x8xf32>
    %cst_16 = arith.constant dense<0.000000e+00> : vector<8xf32>
    %70 = vector.multi_reduction <add>, %69, %cst_16 [1] : vector<8x8xf32> to vector<8xf32>
    %71 = vector.shape_cast %70 : vector<8xf32> to vector<8x1xf32>
    %72 = tpu.reciprocal %71 {approx = true} : vector<8x1xf32> -> vector<8x1xf32>
    %73 = vector.broadcast %72 : vector<8x1xf32> to vector<8x8xf32>
    %74 = arith.mulf %69, %73 : vector<8x8xf32>
    %75 = arith.truncf %74 : vector<8x8xf32> to vector<8x8xbf16>
    %cst_17 = arith.constant dense<0.000000e+00> : vector<8x16xf32>
    %76 = tpu.matmul %75, %60, %cst_17 {dimension_numbers = #tpu.dot_dimension_numbers<[1], [0], [0], [1], [0, 0, 1, 1], [], []>} : vector<8x8xbf16>, vector<8x16xbf16>, vector<8x16xf32> -> vector<8x16xf32>
    %77 = vector.extract_strided_slice %2 {offsets = [0, 48], sizes = [8, 16], strides = [1, 1]} : vector<8x64xf32> to vector<8x16xf32>
    %78 = arith.truncf %77 : vector<8x16xf32> to vector<8x16xbf16>
    %79 = vector.extract_strided_slice %3 {offsets = [0, 48], sizes = [8, 16], strides = [1, 1]} : vector<8x64xf32> to vector<8x16xf32>
    %80 = arith.truncf %79 : vector<8x16xf32> to vector<8x16xbf16>
    %81 = vector.extract_strided_slice %4 {offsets = [0, 48], sizes = [8, 16], strides = [1, 1]} : vector<8x64xf32> to vector<8x16xf32>
    %82 = arith.truncf %81 : vector<8x16xf32> to vector<8x16xbf16>
    %cst_18 = arith.constant dense<0.000000e+00> : vector<8x8xf32>
    %83 = tpu.matmul %78, %80, %cst_18 {dimension_numbers = #tpu.dot_dimension_numbers<[1], [1], [0], [0], [0, 0, 1, 0], [], []>} : vector<8x16xbf16>, vector<8x16xbf16>, vector<8x8xf32> -> vector<8x8xf32>
    %cst_19 = arith.constant 2.500000e-01 : f32
    %84 = vector.broadcast %cst_19 : f32 to vector<8x8xf32>
    %85 = arith.mulf %83, %84 : vector<8x8xf32>
    %86 = arith.addf %85, %10 : vector<8x8xf32>
    %cst_20 = arith.constant dense<0xFF800000> : vector<8xf32>
    %87 = vector.multi_reduction <maximumf>, %86, %cst_20 [1] : vector<8x8xf32> to vector<8xf32>
    %88 = vector.shape_cast %87 : vector<8xf32> to vector<8x1xf32>
    %89 = vector.broadcast %88 : vector<8x1xf32> to vector<8x8xf32>
    %90 = arith.subf %86, %89 : vector<8x8xf32>
    %91 = math.exp %90 : vector<8x8xf32>
    %cst_21 = arith.constant dense<0.000000e+00> : vector<8xf32>
    %92 = vector.multi_reduction <add>, %91, %cst_21 [1] : vector<8x8xf32> to vector<8xf32>
    %93 = vector.shape_cast %92 : vector<8xf32> to vector<8x1xf32>
    %94 = tpu.reciprocal %93 {approx = true} : vector<8x1xf32> -> vector<8x1xf32>
    %95 = vector.broadcast %94 : vector<8x1xf32> to vector<8x8xf32>
    %96 = arith.mulf %91, %95 : vector<8x8xf32>
    %97 = arith.truncf %96 : vector<8x8xf32> to vector<8x8xbf16>
    %cst_22 = arith.constant dense<0.000000e+00> : vector<8x16xf32>
    %98 = tpu.matmul %97, %82, %cst_22 {dimension_numbers = #tpu.dot_dimension_numbers<[1], [0], [0], [1], [0, 0, 1, 1], [], []>} : vector<8x8xbf16>, vector<8x16xbf16>, vector<8x16xf32> -> vector<8x16xf32>
    %99 = tpu.concatenate %32, %54, %76, %98 in 1 : vector<8x16xf32>, vector<8x16xf32>, vector<8x16xf32>, vector<8x16xf32> -> vector<8x64xf32>
    %c0_23 = arith.constant 0 : index
    %c0_24 = arith.constant 0 : index
    %c0_25 = arith.constant 0 : index
    %100 = vector.load %arg2[%c0_23, %c0_24, %c0_25] : memref<1x8x64xf32, #tpu.memory_space<vmem>>, vector<1x8x64xf32>
    %101 = vector.shape_cast %100 : vector<1x8x64xf32> to vector<8x64xf32>
    %102 = vector.shape_cast %99 : vector<8x64xf32> to vector<1x8x64xf32>
    tpu.vector_store %arg2[%c0_23, %c0_24, %c0_25], %102 {strides = array<i32>} : memref<1x8x64xf32, #tpu.memory_space<vmem>>, vector<1x8x64xf32>,
    return
  }
  func.func @transform_0(%arg0: i32) -> (i32, i32, i32) {
    %c0_i32 = arith.constant 0 : i32
    %c0_i32_0 = arith.constant 0 : i32
    %c0_i32_1 = arith.constant 0 : i32
    return %arg0, %c0_i32, %c0_i32_0 : i32, i32, i32
  }
  func.func @transform_1(%arg0: i32) -> (i32, i32, i32) {
    %c0_i32 = arith.constant 0 : i32
    %c0_i32_0 = arith.constant 0 : i32
    %c0_i32_1 = arith.constant 0 : i32
    return %arg0, %c0_i32, %c0_i32_0 : i32, i32, i32
  }
}

module attributes {stable_mosaic.version = 11 : i64} {
  func.func @_fused_linear_kernel(%arg0: i32, %arg1: i32, %arg2: memref<16x64xf32, #tpu.memory_space<vmem>>, %arg3: memref<64x64xbf16, #tpu.memory_space<vmem>>, %arg4: memref<16x64xf32, #tpu.memory_space<vmem>>) attributes {dimension_semantics = [#tpu.dimension_semantics<parallel>, #tpu.dimension_semantics<parallel>], iteration_bounds = array<i64: 1, 1>, scalar_prefetch = 0 : i64, scratch_operands = 0 : i64, tpu.core_type = #tpu.core_type<tc>, window_params = [{transform_indices = @transform_0, window_bounds = array<i64: 16, 64>}, {transform_indices = @transform_1, window_bounds = array<i64: 64, 64>}, {transform_indices = @transform_2, window_bounds = array<i64: 16, 64>}]} {
    %c0 = arith.constant 0 : index
    %c0_0 = arith.constant 0 : index
    %0 = vector.load %arg2[%c0, %c0_0] : memref<16x64xf32, #tpu.memory_space<vmem>>, vector<16x64xf32>
    %1 = arith.truncf %0 : vector<16x64xf32> to vector<16x64xbf16>
    %c0_1 = arith.constant 0 : index
    %c0_2 = arith.constant 0 : index
    %2 = vector.load %arg3[%c0_1, %c0_2] : memref<64x64xbf16, #tpu.memory_space<vmem>>, vector<64x64xbf16>
    %cst = arith.constant dense<0.000000e+00> : vector<16x64xf32>
    %3 = tpu.matmul %1, %2, %cst {dimension_numbers = #tpu.dot_dimension_numbers<[1], [0], [0], [1], [0, 0, 1, 1], [], []>} : vector<16x64xbf16>, vector<64x64xbf16>, vector<16x64xf32> -> vector<16x64xf32>
    %c0_3 = arith.constant 0 : index
    %c0_4 = arith.constant 0 : index
    %4 = vector.load %arg4[%c0_3, %c0_4] : memref<16x64xf32, #tpu.memory_space<vmem>>, vector<16x64xf32>
    tpu.vector_store %arg4[%c0_3, %c0_4], %3 {strides = array<i32>} : memref<16x64xf32, #tpu.memory_space<vmem>>, vector<16x64xf32>,
    return
  }
  func.func @transform_0(%arg0: i32, %arg1: i32) -> (i32, i32) {
    %c0_i32 = arith.constant 0 : i32
    %c0_i32_0 = arith.constant 0 : i32
    return %arg0, %c0_i32 : i32, i32
  }
  func.func @transform_1(%arg0: i32, %arg1: i32) -> (i32, i32) {
    %c0_i32 = arith.constant 0 : i32
    %c0_i32_0 = arith.constant 0 : i32
    return %c0_i32, %arg1 : i32, i32
  }
  func.func @transform_2(%arg0: i32, %arg1: i32) -> (i32, i32) {
    %c0_i32 = arith.constant 0 : i32
    return %arg0, %arg1 : i32, i32
  }
}

module attributes {stable_mosaic.version = 11 : i64} {
  func.func @_fused_linear_kernel(%arg0: i32, %arg1: i32, %arg2: memref<16x64xf32, #tpu.memory_space<vmem>>, %arg3: memref<64x128xbf16, #tpu.memory_space<vmem>>, %arg4: memref<16x128xf32, #tpu.memory_space<vmem>>) attributes {dimension_semantics = [#tpu.dimension_semantics<parallel>, #tpu.dimension_semantics<parallel>], iteration_bounds = array<i64: 1, 1>, scalar_prefetch = 0 : i64, scratch_operands = 0 : i64, tpu.core_type = #tpu.core_type<tc>, window_params = [{transform_indices = @transform_0, window_bounds = array<i64: 16, 64>}, {transform_indices = @transform_1, window_bounds = array<i64: 64, 128>}, {transform_indices = @transform_2, window_bounds = array<i64: 16, 128>}]} {
    %c0 = arith.constant 0 : index
    %c0_0 = arith.constant 0 : index
    %0 = vector.load %arg2[%c0, %c0_0] : memref<16x64xf32, #tpu.memory_space<vmem>>, vector<16x64xf32>
    %1 = arith.truncf %0 : vector<16x64xf32> to vector<16x64xbf16>
    %c0_1 = arith.constant 0 : index
    %c0_2 = arith.constant 0 : index
    %2 = vector.load %arg3[%c0_1, %c0_2] : memref<64x128xbf16, #tpu.memory_space<vmem>>, vector<64x128xbf16>
    %cst = arith.constant dense<0.000000e+00> : vector<16x128xf32>
    %3 = tpu.matmul %1, %2, %cst {dimension_numbers = #tpu.dot_dimension_numbers<[1], [0], [0], [1], [0, 0, 1, 1], [], []>} : vector<16x64xbf16>, vector<64x128xbf16>, vector<16x128xf32> -> vector<16x128xf32>
    %c0_3 = arith.constant 0 : index
    %c0_4 = arith.constant 0 : index
    %4 = vector.load %arg4[%c0_3, %c0_4] : memref<16x128xf32, #tpu.memory_space<vmem>>, vector<16x128xf32>
    tpu.vector_store %arg4[%c0_3, %c0_4], %3 {strides = array<i32>} : memref<16x128xf32, #tpu.memory_space<vmem>>, vector<16x128xf32>,
    return
  }
  func.func @transform_0(%arg0: i32, %arg1: i32) -> (i32, i32) {
    %c0_i32 = arith.constant 0 : i32
    %c0_i32_0 = arith.constant 0 : i32
    return %arg0, %c0_i32 : i32, i32
  }
  func.func @transform_1(%arg0: i32, %arg1: i32) -> (i32, i32) {
    %c0_i32 = arith.constant 0 : i32
    %c0_i32_0 = arith.constant 0 : i32
    return %c0_i32, %arg1 : i32, i32
  }
  func.func @transform_2(%arg0: i32, %arg1: i32) -> (i32, i32) {
    %c0_i32 = arith.constant 0 : i32
    return %arg0, %arg1 : i32, i32
  }
}

module attributes {stable_mosaic.version = 11 : i64} {
  func.func @_cross_attn_kernel(%arg0: i32, %arg1: memref<1x8x64xf32, #tpu.memory_space<vmem>>, %arg2: memref<1x8x128xf32, #tpu.memory_space<vmem>>, %arg3: memref<1x8x64xf32, #tpu.memory_space<vmem>>) attributes {dimension_semantics = [#tpu.dimension_semantics<parallel>], iteration_bounds = array<i64: 2>, scalar_prefetch = 0 : i64, scratch_operands = 0 : i64, tpu.core_type = #tpu.core_type<tc>, window_params = [{transform_indices = @transform_0, window_bounds = array<i64: 1, 8, 64>}, {transform_indices = @transform_1, window_bounds = array<i64: 1, 8, 128>}, {transform_indices = @transform_2, window_bounds = array<i64: 1, 8, 64>}]} {
    %c0 = arith.constant 0 : index
    %c0_0 = arith.constant 0 : index
    %c0_1 = arith.constant 0 : index
    %0 = vector.load %arg1[%c0, %c0_0, %c0_1] : memref<1x8x64xf32, #tpu.memory_space<vmem>>, vector<1x8x64xf32>
    %1 = vector.shape_cast %0 : vector<1x8x64xf32> to vector<8x64xf32>
    %c0_2 = arith.constant 0 : index
    %c0_3 = arith.constant 0 : index
    %c0_4 = arith.constant 0 : index
    %2 = vector.load %arg2[%c0_2, %c0_3, %c0_4] : memref<1x8x128xf32, #tpu.memory_space<vmem>>, vector<1x8x128xf32>
    %3 = vector.shape_cast %2 : vector<1x8x128xf32> to vector<8x128xf32>
    %4 = vector.extract_strided_slice %3 {offsets = [0, 0], sizes = [8, 64], strides = [1, 1]} : vector<8x128xf32> to vector<8x64xf32>
    %5 = vector.extract_strided_slice %3 {offsets = [0, 64], sizes = [8, 64], strides = [1, 1]} : vector<8x128xf32> to vector<8x64xf32>
    %6 = vector.extract_strided_slice %1 {offsets = [0, 0], sizes = [8, 16], strides = [1, 1]} : vector<8x64xf32> to vector<8x16xf32>
    %7 = arith.truncf %6 : vector<8x16xf32> to vector<8x16xbf16>
    %8 = vector.extract_strided_slice %4 {offsets = [0, 0], sizes = [8, 16], strides = [1, 1]} : vector<8x64xf32> to vector<8x16xf32>
    %9 = arith.truncf %8 : vector<8x16xf32> to vector<8x16xbf16>
    %10 = vector.extract_strided_slice %5 {offsets = [0, 0], sizes = [8, 16], strides = [1, 1]} : vector<8x64xf32> to vector<8x16xf32>
    %11 = arith.truncf %10 : vector<8x16xf32> to vector<8x16xbf16>
    %cst = arith.constant dense<0.000000e+00> : vector<8x8xf32>
    %12 = tpu.matmul %7, %9, %cst {dimension_numbers = #tpu.dot_dimension_numbers<[1], [1], [0], [0], [0, 0, 1, 0], [], []>} : vector<8x16xbf16>, vector<8x16xbf16>, vector<8x8xf32> -> vector<8x8xf32>
    %cst_5 = arith.constant 2.500000e-01 : f32
    %13 = vector.broadcast %cst_5 : f32 to vector<8x8xf32>
    %14 = arith.mulf %12, %13 : vector<8x8xf32>
    %cst_6 = arith.constant dense<0xFF800000> : vector<8xf32>
    %15 = vector.multi_reduction <maximumf>, %14, %cst_6 [1] : vector<8x8xf32> to vector<8xf32>
    %16 = vector.shape_cast %15 : vector<8xf32> to vector<8x1xf32>
    %17 = vector.broadcast %16 : vector<8x1xf32> to vector<8x8xf32>
    %18 = arith.subf %14, %17 : vector<8x8xf32>
    %19 = math.exp %18 : vector<8x8xf32>
    %cst_7 = arith.constant dense<0.000000e+00> : vector<8xf32>
    %20 = vector.multi_reduction <add>, %19, %cst_7 [1] : vector<8x8xf32> to vector<8xf32>
    %21 = vector.shape_cast %20 : vector<8xf32> to vector<8x1xf32>
    %22 = tpu.reciprocal %21 {approx = true} : vector<8x1xf32> -> vector<8x1xf32>
    %23 = vector.broadcast %22 : vector<8x1xf32> to vector<8x8xf32>
    %24 = arith.mulf %19, %23 : vector<8x8xf32>
    %25 = arith.truncf %24 : vector<8x8xf32> to vector<8x8xbf16>
    %cst_8 = arith.constant dense<0.000000e+00> : vector<8x16xf32>
    %26 = tpu.matmul %25, %11, %cst_8 {dimension_numbers = #tpu.dot_dimension_numbers<[1], [0], [0], [1], [0, 0, 1, 1], [], []>} : vector<8x8xbf16>, vector<8x16xbf16>, vector<8x16xf32> -> vector<8x16xf32>
    %27 = vector.extract_strided_slice %1 {offsets = [0, 16], sizes = [8, 16], strides = [1, 1]} : vector<8x64xf32> to vector<8x16xf32>
    %28 = arith.truncf %27 : vector<8x16xf32> to vector<8x16xbf16>
    %29 = vector.extract_strided_slice %4 {offsets = [0, 16], sizes = [8, 16], strides = [1, 1]} : vector<8x64xf32> to vector<8x16xf32>
    %30 = arith.truncf %29 : vector<8x16xf32> to vector<8x16xbf16>
    %31 = vector.extract_strided_slice %5 {offsets = [0, 16], sizes = [8, 16], strides = [1, 1]} : vector<8x64xf32> to vector<8x16xf32>
    %32 = arith.truncf %31 : vector<8x16xf32> to vector<8x16xbf16>
    %cst_9 = arith.constant dense<0.000000e+00> : vector<8x8xf32>
    %33 = tpu.matmul %28, %30, %cst_9 {dimension_numbers = #tpu.dot_dimension_numbers<[1], [1], [0], [0], [0, 0, 1, 0], [], []>} : vector<8x16xbf16>, vector<8x16xbf16>, vector<8x8xf32> -> vector<8x8xf32>
    %cst_10 = arith.constant 2.500000e-01 : f32
    %34 = vector.broadcast %cst_10 : f32 to vector<8x8xf32>
    %35 = arith.mulf %33, %34 : vector<8x8xf32>
    %cst_11 = arith.constant dense<0xFF800000> : vector<8xf32>
    %36 = vector.multi_reduction <maximumf>, %35, %cst_11 [1] : vector<8x8xf32> to vector<8xf32>
    %37 = vector.shape_cast %36 : vector<8xf32> to vector<8x1xf32>
    %38 = vector.broadcast %37 : vector<8x1xf32> to vector<8x8xf32>
    %39 = arith.subf %35, %38 : vector<8x8xf32>
    %40 = math.exp %39 : vector<8x8xf32>
    %cst_12 = arith.constant dense<0.000000e+00> : vector<8xf32>
    %41 = vector.multi_reduction <add>, %40, %cst_12 [1] : vector<8x8xf32> to vector<8xf32>
    %42 = vector.shape_cast %41 : vector<8xf32> to vector<8x1xf32>
    %43 = tpu.reciprocal %42 {approx = true} : vector<8x1xf32> -> vector<8x1xf32>
    %44 = vector.broadcast %43 : vector<8x1xf32> to vector<8x8xf32>
    %45 = arith.mulf %40, %44 : vector<8x8xf32>
    %46 = arith.truncf %45 : vector<8x8xf32> to vector<8x8xbf16>
    %cst_13 = arith.constant dense<0.000000e+00> : vector<8x16xf32>
    %47 = tpu.matmul %46, %32, %cst_13 {dimension_numbers = #tpu.dot_dimension_numbers<[1], [0], [0], [1], [0, 0, 1, 1], [], []>} : vector<8x8xbf16>, vector<8x16xbf16>, vector<8x16xf32> -> vector<8x16xf32>
    %48 = vector.extract_strided_slice %1 {offsets = [0, 32], sizes = [8, 16], strides = [1, 1]} : vector<8x64xf32> to vector<8x16xf32>
    %49 = arith.truncf %48 : vector<8x16xf32> to vector<8x16xbf16>
    %50 = vector.extract_strided_slice %4 {offsets = [0, 32], sizes = [8, 16], strides = [1, 1]} : vector<8x64xf32> to vector<8x16xf32>
    %51 = arith.truncf %50 : vector<8x16xf32> to vector<8x16xbf16>
    %52 = vector.extract_strided_slice %5 {offsets = [0, 32], sizes = [8, 16], strides = [1, 1]} : vector<8x64xf32> to vector<8x16xf32>
    %53 = arith.truncf %52 : vector<8x16xf32> to vector<8x16xbf16>
    %cst_14 = arith.constant dense<0.000000e+00> : vector<8x8xf32>
    %54 = tpu.matmul %49, %51, %cst_14 {dimension_numbers = #tpu.dot_dimension_numbers<[1], [1], [0], [0], [0, 0, 1, 0], [], []>} : vector<8x16xbf16>, vector<8x16xbf16>, vector<8x8xf32> -> vector<8x8xf32>
    %cst_15 = arith.constant 2.500000e-01 : f32
    %55 = vector.broadcast %cst_15 : f32 to vector<8x8xf32>
    %56 = arith.mulf %54, %55 : vector<8x8xf32>
    %cst_16 = arith.constant dense<0xFF800000> : vector<8xf32>
    %57 = vector.multi_reduction <maximumf>, %56, %cst_16 [1] : vector<8x8xf32> to vector<8xf32>
    %58 = vector.shape_cast %57 : vector<8xf32> to vector<8x1xf32>
    %59 = vector.broadcast %58 : vector<8x1xf32> to vector<8x8xf32>
    %60 = arith.subf %56, %59 : vector<8x8xf32>
    %61 = math.exp %60 : vector<8x8xf32>
    %cst_17 = arith.constant dense<0.000000e+00> : vector<8xf32>
    %62 = vector.multi_reduction <add>, %61, %cst_17 [1] : vector<8x8xf32> to vector<8xf32>
    %63 = vector.shape_cast %62 : vector<8xf32> to vector<8x1xf32>
    %64 = tpu.reciprocal %63 {approx = true} : vector<8x1xf32> -> vector<8x1xf32>
    %65 = vector.broadcast %64 : vector<8x1xf32> to vector<8x8xf32>
    %66 = arith.mulf %61, %65 : vector<8x8xf32>
    %67 = arith.truncf %66 : vector<8x8xf32> to vector<8x8xbf16>
    %cst_18 = arith.constant dense<0.000000e+00> : vector<8x16xf32>
    %68 = tpu.matmul %67, %53, %cst_18 {dimension_numbers = #tpu.dot_dimension_numbers<[1], [0], [0], [1], [0, 0, 1, 1], [], []>} : vector<8x8xbf16>, vector<8x16xbf16>, vector<8x16xf32> -> vector<8x16xf32>
    %69 = vector.extract_strided_slice %1 {offsets = [0, 48], sizes = [8, 16], strides = [1, 1]} : vector<8x64xf32> to vector<8x16xf32>
    %70 = arith.truncf %69 : vector<8x16xf32> to vector<8x16xbf16>
    %71 = vector.extract_strided_slice %4 {offsets = [0, 48], sizes = [8, 16], strides = [1, 1]} : vector<8x64xf32> to vector<8x16xf32>
    %72 = arith.truncf %71 : vector<8x16xf32> to vector<8x16xbf16>
    %73 = vector.extract_strided_slice %5 {offsets = [0, 48], sizes = [8, 16], strides = [1, 1]} : vector<8x64xf32> to vector<8x16xf32>
    %74 = arith.truncf %73 : vector<8x16xf32> to vector<8x16xbf16>
    %cst_19 = arith.constant dense<0.000000e+00> : vector<8x8xf32>
    %75 = tpu.matmul %70, %72, %cst_19 {dimension_numbers = #tpu.dot_dimension_numbers<[1], [1], [0], [0], [0, 0, 1, 0], [], []>} : vector<8x16xbf16>, vector<8x16xbf16>, vector<8x8xf32> -> vector<8x8xf32>
    %cst_20 = arith.constant 2.500000e-01 : f32
    %76 = vector.broadcast %cst_20 : f32 to vector<8x8xf32>
    %77 = arith.mulf %75, %76 : vector<8x8xf32>
    %cst_21 = arith.constant dense<0xFF800000> : vector<8xf32>
    %78 = vector.multi_reduction <maximumf>, %77, %cst_21 [1] : vector<8x8xf32> to vector<8xf32>
    %79 = vector.shape_cast %78 : vector<8xf32> to vector<8x1xf32>
    %80 = vector.broadcast %79 : vector<8x1xf32> to vector<8x8xf32>
    %81 = arith.subf %77, %80 : vector<8x8xf32>
    %82 = math.exp %81 : vector<8x8xf32>
    %cst_22 = arith.constant dense<0.000000e+00> : vector<8xf32>
    %83 = vector.multi_reduction <add>, %82, %cst_22 [1] : vector<8x8xf32> to vector<8xf32>
    %84 = vector.shape_cast %83 : vector<8xf32> to vector<8x1xf32>
    %85 = tpu.reciprocal %84 {approx = true} : vector<8x1xf32> -> vector<8x1xf32>
    %86 = vector.broadcast %85 : vector<8x1xf32> to vector<8x8xf32>
    %87 = arith.mulf %82, %86 : vector<8x8xf32>
    %88 = arith.truncf %87 : vector<8x8xf32> to vector<8x8xbf16>
    %cst_23 = arith.constant dense<0.000000e+00> : vector<8x16xf32>
    %89 = tpu.matmul %88, %74, %cst_23 {dimension_numbers = #tpu.dot_dimension_numbers<[1], [0], [0], [1], [0, 0, 1, 1], [], []>} : vector<8x8xbf16>, vector<8x16xbf16>, vector<8x16xf32> -> vector<8x16xf32>
    %90 = tpu.concatenate %26, %47, %68, %89 in 1 : vector<8x16xf32>, vector<8x16xf32>, vector<8x16xf32>, vector<8x16xf32> -> vector<8x64xf32>
    %c0_24 = arith.constant 0 : index
    %c0_25 = arith.constant 0 : index
    %c0_26 = arith.constant 0 : index
    %91 = vector.load %arg3[%c0_24, %c0_25, %c0_26] : memref<1x8x64xf32, #tpu.memory_space<vmem>>, vector<1x8x64xf32>
    %92 = vector.shape_cast %91 : vector<1x8x64xf32> to vector<8x64xf32>
    %93 = vector.shape_cast %90 : vector<8x64xf32> to vector<1x8x64xf32>
    tpu.vector_store %arg3[%c0_24, %c0_25, %c0_26], %93 {strides = array<i32>} : memref<1x8x64xf32, #tpu.memory_space<vmem>>, vector<1x8x64xf32>,
    return
  }
  func.func @transform_0(%arg0: i32) -> (i32, i32, i32) {
    %c0_i32 = arith.constant 0 : i32
    %c0_i32_0 = arith.constant 0 : i32
    %c0_i32_1 = arith.constant 0 : i32
    return %arg0, %c0_i32, %c0_i32_0 : i32, i32, i32
  }
  func.func @transform_1(%arg0: i32) -> (i32, i32, i32) {
    %c0_i32 = arith.constant 0 : i32
    %c0_i32_0 = arith.constant 0 : i32
    %c0_i32_1 = arith.constant 0 : i32
    return %arg0, %c0_i32, %c0_i32_0 : i32, i32, i32
  }
  func.func @transform_2(%arg0: i32) -> (i32, i32, i32) {
    %c0_i32 = arith.constant 0 : i32
    %c0_i32_0 = arith.constant 0 : i32
    %c0_i32_1 = arith.constant 0 : i32
    return %arg0, %c0_i32, %c0_i32_0 : i32, i32, i32
  }
}

module attributes {stable_mosaic.version = 11 : i64} {
  func.func @_fused_linear_kernel(%arg0: i32, %arg1: i32, %arg2: memref<16x64xf32, #tpu.memory_space<vmem>>, %arg3: memref<1x64xf32, #tpu.memory_space<vmem>>, %arg4: memref<1x64xf32, #tpu.memory_space<vmem>>, %arg5: memref<64x128xbf16, #tpu.memory_space<vmem>>, %arg6: memref<16x128xf32, #tpu.memory_space<vmem>>) attributes {dimension_semantics = [#tpu.dimension_semantics<parallel>, #tpu.dimension_semantics<parallel>], iteration_bounds = array<i64: 1, 1>, scalar_prefetch = 0 : i64, scratch_operands = 0 : i64, tpu.core_type = #tpu.core_type<tc>, window_params = [{transform_indices = @transform_0, window_bounds = array<i64: 16, 64>}, {pipeline_mode = #tpu.pipeline_mode<synchronous>, transform_indices = @transform_1, window_bounds = array<i64: 1, 64>}, {pipeline_mode = #tpu.pipeline_mode<synchronous>, transform_indices = @transform_2, window_bounds = array<i64: 1, 64>}, {transform_indices = @transform_3, window_bounds = array<i64: 64, 128>}, {transform_indices = @transform_4, window_bounds = array<i64: 16, 128>}]} {
    %c0 = arith.constant 0 : index
    %c0_0 = arith.constant 0 : index
    %0 = vector.load %arg2[%c0, %c0_0] : memref<16x64xf32, #tpu.memory_space<vmem>>, vector<16x64xf32>
    %cst = arith.constant dense<0.000000e+00> : vector<16xf32>
    %1 = vector.multi_reduction <add>, %0, %cst [1] : vector<16x64xf32> to vector<16xf32>
    %2 = vector.shape_cast %1 : vector<16xf32> to vector<16x1xf32>
    %cst_1 = arith.constant 6.400000e+01 : f32
    %3 = vector.broadcast %cst_1 : f32 to vector<16x1xf32>
    %4 = arith.divf %2, %3 : vector<16x1xf32>
    %5 = vector.broadcast %4 : vector<16x1xf32> to vector<16x64xf32>
    %6 = arith.subf %0, %5 : vector<16x64xf32>
    %7 = arith.mulf %6, %6 : vector<16x64xf32>
    %cst_2 = arith.constant dense<0.000000e+00> : vector<16xf32>
    %8 = vector.multi_reduction <add>, %7, %cst_2 [1] : vector<16x64xf32> to vector<16xf32>
    %9 = vector.shape_cast %8 : vector<16xf32> to vector<16x1xf32>
    %cst_3 = arith.constant 6.400000e+01 : f32
    %10 = vector.broadcast %cst_3 : f32 to vector<16x1xf32>
    %11 = arith.divf %9, %10 : vector<16x1xf32>
    %12 = vector.broadcast %4 : vector<16x1xf32> to vector<16x64xf32>
    %13 = arith.subf %0, %12 : vector<16x64xf32>
    %cst_4 = arith.constant 9.99999974E-6 : f32
    %14 = vector.broadcast %cst_4 : f32 to vector<16x1xf32>
    %15 = arith.addf %11, %14 : vector<16x1xf32>
    %16 = math.rsqrt %15 : vector<16x1xf32>
    %17 = vector.broadcast %16 : vector<16x1xf32> to vector<16x64xf32>
    %18 = arith.mulf %13, %17 : vector<16x64xf32>
    %c0_5 = arith.constant 0 : index
    %c0_6 = arith.constant 0 : index
    %19 = vector.load %arg3[%c0_5, %c0_6] : memref<1x64xf32, #tpu.memory_space<vmem>>, vector<1x64xf32>
    %20 = vector.broadcast %19 : vector<1x64xf32> to vector<16x64xf32>
    %21 = arith.mulf %20, %18 : vector<16x64xf32>
    %c0_7 = arith.constant 0 : index
    %c0_8 = arith.constant 0 : index
    %22 = vector.load %arg4[%c0_7, %c0_8] : memref<1x64xf32, #tpu.memory_space<vmem>>, vector<1x64xf32>
    %23 = vector.broadcast %22 : vector<1x64xf32> to vector<16x64xf32>
    %24 = arith.addf %21, %23 : vector<16x64xf32>
    %25 = arith.truncf %24 : vector<16x64xf32> to vector<16x64xbf16>
    %c0_9 = arith.constant 0 : index
    %c0_10 = arith.constant 0 : index
    %26 = vector.load %arg5[%c0_9, %c0_10] : memref<64x128xbf16, #tpu.memory_space<vmem>>, vector<64x128xbf16>
    %cst_11 = arith.constant dense<0.000000e+00> : vector<16x128xf32>
    %27 = tpu.matmul %25, %26, %cst_11 {dimension_numbers = #tpu.dot_dimension_numbers<[1], [0], [0], [1], [0, 0, 1, 1], [], []>} : vector<16x64xbf16>, vector<64x128xbf16>, vector<16x128xf32> -> vector<16x128xf32>
    %c0_12 = arith.constant 0 : index
    %c0_13 = arith.constant 0 : index
    %28 = vector.load %arg6[%c0_12, %c0_13] : memref<16x128xf32, #tpu.memory_space<vmem>>, vector<16x128xf32>
    tpu.vector_store %arg6[%c0_12, %c0_13], %27 {strides = array<i32>} : memref<16x128xf32, #tpu.memory_space<vmem>>, vector<16x128xf32>,
    return
  }
  func.func @transform_0(%arg0: i32, %arg1: i32) -> (i32, i32) {
    %c0_i32 = arith.constant 0 : i32
    %c0_i32_0 = arith.constant 0 : i32
    return %arg0, %c0_i32 : i32, i32
  }
  func.func @transform_1(%arg0: i32, %arg1: i32) -> (i32, i32) {
    %c0_i32 = arith.constant 0 : i32
    %c0_i32_0 = arith.constant 0 : i32
    %c0_i32_1 = arith.constant 0 : i32
    return %c0_i32, %c0_i32_0 : i32, i32
  }
  func.func @transform_2(%arg0: i32, %arg1: i32) -> (i32, i32) {
    %c0_i32 = arith.constant 0 : i32
    %c0_i32_0 = arith.constant 0 : i32
    %c0_i32_1 = arith.constant 0 : i32
    return %c0_i32, %c0_i32_0 : i32, i32
  }
  func.func @transform_3(%arg0: i32, %arg1: i32) -> (i32, i32) {
    %c0_i32 = arith.constant 0 : i32
    %c0_i32_0 = arith.constant 0 : i32
    return %c0_i32, %arg1 : i32, i32
  }
  func.func @transform_4(%arg0: i32, %arg1: i32) -> (i32, i32) {
    %c0_i32 = arith.constant 0 : i32
    return %arg0, %arg1 : i32, i32
  }
}

module attributes {stable_mosaic.version = 11 : i64} {
  func.func @_ln_ffn_kernel(%arg0: i32, %arg1: memref<16x64xf32, #tpu.memory_space<vmem>>, %arg2: memref<1x64xf32, #tpu.memory_space<vmem>>, %arg3: memref<1x64xf32, #tpu.memory_space<vmem>>, %arg4: memref<64x256xbf16, #tpu.memory_space<vmem>>, %arg5: memref<1x256xf32, #tpu.memory_space<vmem>>, %arg6: memref<256x64xbf16, #tpu.memory_space<vmem>>, %arg7: memref<1x64xf32, #tpu.memory_space<vmem>>, %arg8: memref<16x64xf32, #tpu.memory_space<vmem>>) attributes {dimension_semantics = [#tpu.dimension_semantics<parallel>], iteration_bounds = array<i64: 1>, scalar_prefetch = 0 : i64, scratch_operands = 0 : i64, tpu.core_type = #tpu.core_type<tc>, window_params = [{transform_indices = @transform_0, window_bounds = array<i64: 16, 64>}, {pipeline_mode = #tpu.pipeline_mode<synchronous>, transform_indices = @transform_1, window_bounds = array<i64: 1, 64>}, {pipeline_mode = #tpu.pipeline_mode<synchronous>, transform_indices = @transform_2, window_bounds = array<i64: 1, 64>}, {pipeline_mode = #tpu.pipeline_mode<synchronous>, transform_indices = @transform_3, window_bounds = array<i64: 64, 256>}, {pipeline_mode = #tpu.pipeline_mode<synchronous>, transform_indices = @transform_4, window_bounds = array<i64: 1, 256>}, {pipeline_mode = #tpu.pipeline_mode<synchronous>, transform_indices = @transform_5, window_bounds = array<i64: 256, 64>}, {pipeline_mode = #tpu.pipeline_mode<synchronous>, transform_indices = @transform_6, window_bounds = array<i64: 1, 64>}, {transform_indices = @transform_7, window_bounds = array<i64: 16, 64>}]} {
    %c0 = arith.constant 0 : index
    %c0_0 = arith.constant 0 : index
    %0 = vector.load %arg1[%c0, %c0_0] : memref<16x64xf32, #tpu.memory_space<vmem>>, vector<16x64xf32>
    %cst = arith.constant dense<0.000000e+00> : vector<16xf32>
    %1 = vector.multi_reduction <add>, %0, %cst [1] : vector<16x64xf32> to vector<16xf32>
    %2 = vector.shape_cast %1 : vector<16xf32> to vector<16x1xf32>
    %cst_1 = arith.constant 6.400000e+01 : f32
    %3 = vector.broadcast %cst_1 : f32 to vector<16x1xf32>
    %4 = arith.divf %2, %3 : vector<16x1xf32>
    %5 = vector.broadcast %4 : vector<16x1xf32> to vector<16x64xf32>
    %6 = arith.subf %0, %5 : vector<16x64xf32>
    %7 = arith.mulf %6, %6 : vector<16x64xf32>
    %cst_2 = arith.constant dense<0.000000e+00> : vector<16xf32>
    %8 = vector.multi_reduction <add>, %7, %cst_2 [1] : vector<16x64xf32> to vector<16xf32>
    %9 = vector.shape_cast %8 : vector<16xf32> to vector<16x1xf32>
    %cst_3 = arith.constant 6.400000e+01 : f32
    %10 = vector.broadcast %cst_3 : f32 to vector<16x1xf32>
    %11 = arith.divf %9, %10 : vector<16x1xf32>
    %12 = vector.broadcast %4 : vector<16x1xf32> to vector<16x64xf32>
    %13 = arith.subf %0, %12 : vector<16x64xf32>
    %cst_4 = arith.constant 9.99999974E-6 : f32
    %14 = vector.broadcast %cst_4 : f32 to vector<16x1xf32>
    %15 = arith.addf %11, %14 : vector<16x1xf32>
    %16 = math.rsqrt %15 : vector<16x1xf32>
    %17 = vector.broadcast %16 : vector<16x1xf32> to vector<16x64xf32>
    %18 = arith.mulf %13, %17 : vector<16x64xf32>
    %c0_5 = arith.constant 0 : index
    %c0_6 = arith.constant 0 : index
    %19 = vector.load %arg2[%c0_5, %c0_6] : memref<1x64xf32, #tpu.memory_space<vmem>>, vector<1x64xf32>
    %20 = vector.broadcast %19 : vector<1x64xf32> to vector<16x64xf32>
    %21 = arith.mulf %20, %18 : vector<16x64xf32>
    %c0_7 = arith.constant 0 : index
    %c0_8 = arith.constant 0 : index
    %22 = vector.load %arg3[%c0_7, %c0_8] : memref<1x64xf32, #tpu.memory_space<vmem>>, vector<1x64xf32>
    %23 = vector.broadcast %22 : vector<1x64xf32> to vector<16x64xf32>
    %24 = arith.addf %21, %23 : vector<16x64xf32>
    %25 = arith.truncf %24 : vector<16x64xf32> to vector<16x64xbf16>
    %c0_9 = arith.constant 0 : index
    %c0_10 = arith.constant 0 : index
    %26 = vector.load %arg4[%c0_9, %c0_10] : memref<64x256xbf16, #tpu.memory_space<vmem>>, vector<64x256xbf16>
    %cst_11 = arith.constant dense<0.000000e+00> : vector<16x256xf32>
    %27 = tpu.matmul %25, %26, %cst_11 {dimension_numbers = #tpu.dot_dimension_numbers<[1], [0], [0], [1], [0, 0, 1, 1], [], []>} : vector<16x64xbf16>, vector<64x256xbf16>, vector<16x256xf32> -> vector<16x256xf32>
    %c0_12 = arith.constant 0 : index
    %c0_13 = arith.constant 0 : index
    %28 = vector.load %arg5[%c0_12, %c0_13] : memref<1x256xf32, #tpu.memory_space<vmem>>, vector<1x256xf32>
    %29 = vector.broadcast %28 : vector<1x256xf32> to vector<16x256xf32>
    %30 = arith.addf %27, %29 : vector<16x256xf32>
    %cst_14 = arith.constant 5.000000e-01 : f32
    %31 = vector.broadcast %cst_14 : f32 to vector<16x256xf32>
    %32 = arith.mulf %31, %30 : vector<16x256xf32>
    %cst_15 = arith.constant 4.471500e-02 : f32
    %33 = vector.broadcast %cst_15 : f32 to vector<16x256xf32>
    %34 = arith.mulf %33, %30 : vector<16x256xf32>
    %35 = arith.mulf %34, %30 : vector<16x256xf32>
    %36 = arith.mulf %35, %30 : vector<16x256xf32>
    %37 = arith.addf %30, %36 : vector<16x256xf32>
    %cst_16 = arith.constant 0.797884583 : f32
    %38 = vector.broadcast %cst_16 : f32 to vector<16x256xf32>
    %39 = arith.mulf %38, %37 : vector<16x256xf32>
    %40 = math.tanh %39 : vector<16x256xf32>
    %cst_17 = arith.constant 1.000000e+00 : f32
    %41 = vector.broadcast %cst_17 : f32 to vector<16x256xf32>
    %42 = arith.addf %41, %40 : vector<16x256xf32>
    %43 = arith.mulf %32, %42 : vector<16x256xf32>
    %44 = arith.truncf %43 : vector<16x256xf32> to vector<16x256xbf16>
    %c0_18 = arith.constant 0 : index
    %c0_19 = arith.constant 0 : index
    %45 = vector.load %arg6[%c0_18, %c0_19] : memref<256x64xbf16, #tpu.memory_space<vmem>>, vector<256x64xbf16>
    %cst_20 = arith.constant dense<0.000000e+00> : vector<16x64xf32>
    %46 = tpu.matmul %44, %45, %cst_20 {dimension_numbers = #tpu.dot_dimension_numbers<[1], [0], [0], [1], [0, 0, 1, 1], [], []>} : vector<16x256xbf16>, vector<256x64xbf16>, vector<16x64xf32> -> vector<16x64xf32>
    %c0_21 = arith.constant 0 : index
    %c0_22 = arith.constant 0 : index
    %47 = vector.load %arg7[%c0_21, %c0_22] : memref<1x64xf32, #tpu.memory_space<vmem>>, vector<1x64xf32>
    %48 = vector.broadcast %47 : vector<1x64xf32> to vector<16x64xf32>
    %49 = arith.addf %46, %48 : vector<16x64xf32>
    %50 = arith.addf %49, %0 : vector<16x64xf32>
    %c0_23 = arith.constant 0 : index
    %c0_24 = arith.constant 0 : index
    %51 = vector.load %arg8[%c0_23, %c0_24] : memref<16x64xf32, #tpu.memory_space<vmem>>, vector<16x64xf32>
    tpu.vector_store %arg8[%c0_23, %c0_24], %50 {strides = array<i32>} : memref<16x64xf32, #tpu.memory_space<vmem>>, vector<16x64xf32>,
    return
  }
  func.func @transform_0(%arg0: i32) -> (i32, i32) {
    %c0_i32 = arith.constant 0 : i32
    %c0_i32_0 = arith.constant 0 : i32
    return %arg0, %c0_i32 : i32, i32
  }
  func.func @transform_1(%arg0: i32) -> (i32, i32) {
    %c0_i32 = arith.constant 0 : i32
    %c0_i32_0 = arith.constant 0 : i32
    %c0_i32_1 = arith.constant 0 : i32
    return %c0_i32, %c0_i32_0 : i32, i32
  }
  func.func @transform_2(%arg0: i32) -> (i32, i32) {
    %c0_i32 = arith.constant 0 : i32
    %c0_i32_0 = arith.constant 0 : i32
    %c0_i32_1 = arith.constant 0 : i32
    return %c0_i32, %c0_i32_0 : i32, i32
  }
  func.func @transform_3(%arg0: i32) -> (i32, i32) {
    %c0_i32 = arith.constant 0 : i32
    %c0_i32_0 = arith.constant 0 : i32
    %c0_i32_1 = arith.constant 0 : i32
    return %c0_i32, %c0_i32_0 : i32, i32
  }
  func.func @transform_4(%arg0: i32) -> (i32, i32) {
    %c0_i32 = arith.constant 0 : i32
    %c0_i32_0 = arith.constant 0 : i32
    %c0_i32_1 = arith.constant 0 : i32
    return %c0_i32, %c0_i32_0 : i32, i32
  }
  func.func @transform_5(%arg0: i32) -> (i32, i32) {
    %c0_i32 = arith.constant 0 : i32
    %c0_i32_0 = arith.constant 0 : i32
    %c0_i32_1 = arith.constant 0 : i32
    return %c0_i32, %c0_i32_0 : i32, i32
  }
  func.func @transform_6(%arg0: i32) -> (i32, i32) {
    %c0_i32 = arith.constant 0 : i32
    %c0_i32_0 = arith.constant 0 : i32
    %c0_i32_1 = arith.constant 0 : i32
    return %c0_i32, %c0_i32_0 : i32, i32
  }
  func.func @transform_7(%arg0: i32) -> (i32, i32) {
    %c0_i32 = arith.constant 0 : i32
    %c0_i32_0 = arith.constant 0 : i32
    return %arg0, %c0_i32 : i32, i32
  }
}

</mosaic_0001>

<bundles_post_ra>
// kernel: cross_attention_gpt2_forward.23
= control target key start
LH: loop header
LB: loop body
LE: loop exit
PB: predicated region body
PF: predicated region fallthrough
CT: control target
= control target key end

     0   :  { %v144_v0 = vmov 0.0   ;;  %vm145_vm0 = vmmov 0   ;;  %vm60_vm1 = vcmask 523264   ;;  %s207_s1 = inlined_call_operand.vmem [shape: bf16[64,64], index: 1, kind: input, shape index: {}]   ;;  %s208_s0 = inlined_call_operand.vmem [shape: f32[16,64], index: 0, kind: input, shape index: {}]   ;;  %s209_s2 = inlined_call_operand.vmem [shape: f32[1,64], index: 2, kind: input, shape index: {}]   ;;  %s210_s3 = inlined_call_operand.vmem [shape: f32[16,64], index: 3, kind: input, shape index: {}]   ;;  %s211_s4 = inlined_call_operand.vmem [shape: f32[16,64], index: 4, kind: output, shape index: {}]  }
   0x1   :  { %126 = vmatprep.subr.bf16.mxu0 %v144_v0  ;;  %v140_v1 = vld [vmem:[%s207_s1 + $0x18] sm:$0xff]   ;;  %134 = vmatprep.mubr.msk.bf16.mxu0 %vm145_vm0, %v144_v0  ;;  %v141_v2 = vld [vmem:[%s207_s1 + $0x10] sm:$0xff]   ;;  %v142_v3 = vld [vmem:[%s207_s1 + $0x8] sm:$0xff]  }
   0x2   :  { %127 = vmatpush3.bf16.msra.mxu0 %v140_v1  ;;  %v143_v4 = vld [vmem:[%s207_s1] sm:$0xff]   ;;  %v19_v6 = vld [vmem:[%s208_s0 + $0x8] sm:$0xff] }
   0x3   :  { %128 = vmatprep.subr.bf16.mxu0 %v144_v0  ;;  %v18_v5 = vld [vmem:[%s208_s0] sm:$0xff]  ;;  %v106_v15 = vld [vmem:[%s210_s3 + $0x8] sm:$0xff] }
   0x4   :  { %v20_v7 = vpack.c.bf16 %v19_v6, %v18_v5  ;;  %v115_v8 = vld [vmem:[%s209_s2] ss:$0 sm:$0xff] }
   0x5   :  { %v105_v10 = vld [vmem:[%s210_s3] sm:$0xff] }
   0x6   :  { %129 = vmatpush3.bf16.msra.mxu0 %v141_v2 }
   0x7   :  { %130 = vmatprep.subr.bf16.mxu0 %v144_v0 }
   0xa   :  { %131 = vmatpush3.bf16.msra.mxu0 %v142_v3 }
   0xb   :  { %132 = vmatprep.subr.bf16.mxu0 %v144_v0 }
   0xe   :  { %133 = vmatpush3.bf16.msra.mxu0 %v143_v4 }
  0x11   :  { %135 = vmatmul.mubr.msk.bf16.vlgmr.msra.gmra.mxu0 %vm60_vm1, %v20_v7 }
  0xd1   :  { %v98_v9 = vpop.f32.mrf.mxu0 }
  0xd2   :  { %v99_v11 = vadd.f32 %v115_v8, %v98_v9 }
  0xd3   :  { %v136_v12 = vpop.f32.mrf.mxu0 }
  0xd4   :  { %v107_v13 = vadd.f32 %v105_v10, %v99_v11 }
  0xd5   :  { %v101_v14 = vpop.f32.mrf.mxu0 }
  0xd6   :  { %109 = vst.msk [vmem:[%s211_s4] sm:$0xff] %vm60_vm1, %v107_v13  ;;  %v102_v16 = vadd.f32 %v115_v8, %v101_v14 }
  0xd7   :  { %v137_v17 = vpop.f32.mrf.mxu0 }
  0xd8   :  { %v108_v18 = vadd.f32 %v106_v15, %v102_v16 }
  0xda   :  { %110 = vst.msk [vmem:[%s211_s4 + $0x8] sm:$0xff] %vm60_vm1, %v108_v18 }

// kernel: cross_attention_gpt2_forward.24
= control target key start
LH: loop header
LB: loop body
LE: loop exit
PB: predicated region body
PF: predicated region fallthrough
CT: control target
= control target key end

     0   :  { %v126_v0 = vmov 0.0   ;;  %vm127_vm0 = vmmov 0   ;;  %vm47_vm1 = vcmask 523264   ;;  %s167_s1 = inlined_call_operand.vmem [shape: bf16[64,64], index: 1, kind: input, shape index: {}]   ;;  %s168_s0 = inlined_call_operand.vmem [shape: f32[16,64], index: 0, kind: input, shape index: {}]   ;;  %s169_s2 = inlined_call_operand.vmem [shape: f32[16,64], index: 2, kind: output, shape index: {}]  }
   0x1   :  { %108 = vmatprep.subr.bf16.mxu0 %v126_v0  ;;  %v122_v1 = vld [vmem:[%s167_s1 + $0x18] sm:$0xff]   ;;  %116 = vmatprep.mubr.msk.bf16.mxu0 %vm127_vm0, %v126_v0  ;;  %v123_v2 = vld [vmem:[%s167_s1 + $0x10] sm:$0xff]   ;;  %v124_v3 = vld [vmem:[%s167_s1 + $0x8] sm:$0xff]  }
   0x2   :  { %109 = vmatpush3.bf16.msra.mxu0 %v122_v1  ;;  %v125_v4 = vld [vmem:[%s167_s1] sm:$0xff]   ;;  %v13_v6 = vld [vmem:[%s168_s0 + $0x8] sm:$0xff] }
   0x3   :  { %110 = vmatprep.subr.bf16.mxu0 %v126_v0  ;;  %v12_v5 = vld [vmem:[%s168_s0] sm:$0xff] }
   0x4   :  { %v14_v7 = vpack.c.bf16 %v13_v6, %v12_v5 }
   0x6   :  { %111 = vmatpush3.bf16.msra.mxu0 %v123_v2 }
   0x7   :  { %112 = vmatprep.subr.bf16.mxu0 %v126_v0 }
   0xa   :  { %113 = vmatpush3.bf16.msra.mxu0 %v124_v3 }
   0xb   :  { %114 = vmatprep.subr.bf16.mxu0 %v126_v0 }
   0xe   :  { %115 = vmatpush3.bf16.msra.mxu0 %v125_v4 }
  0x11   :  { %117 = vmatmul.mubr.msk.bf16.vlgmr.msra.gmra.mxu0 %vm47_vm1, %v14_v7 }
  0xd1   :  { %v85_v8 = vpop.f32.mrf.mxu0 }
  0xd2   :  { %92 = vst.msk [vmem:[%s169_s2] sm:$0xff] %vm47_vm1, %v85_v8 }
  0xd3   :  { %v118_v9 = vpop.f32.mrf.mxu0 }
  0xd5   :  { %v88_v10 = vpop.f32.mrf.mxu0 }
  0xd6   :  { %93 = vst.msk [vmem:[%s169_s2 + $0x8] sm:$0xff] %vm47_vm1, %v88_v10 }
  0xd7   :  { %v119_v11 = vpop.f32.mrf.mxu0 }

// kernel: cross_attention_gpt2_forward.21
= control target key start
LH: loop header
LB: loop body
LE: loop exit
PB: predicated region body
PF: predicated region fallthrough
CT: control target
= control target key end

     0   :  { %vm20_vm0 = vcmask 523264   ;;  %v197_v15 = vmov 0   ;;  %s278_s0 = inlined_call_operand.vmem [shape: f32[16,64], index: 0, kind: input, shape index: {}]   ;;  %s279_s3 = inlined_call_operand.vmem [shape: bf16[64,192], index: 3, kind: input, shape index: {}]   ;;  %s280_s1 = inlined_call_operand.vmem [shape: f32[1,64], index: 1, kind: input, shape index: {}]   ;;  %s281_s2 = inlined_call_operand.vmem [shape: f32[1,64], index: 2, kind: input, shape index: {}]   ;;  %s282_s4 = inlined_call_operand.vmem [shape: f32[16,192], index: 4, kind: output, shape index: {}]  }
   0x1   :  { %v18_v0 = vld [vmem:[%s278_s0] sm:$0xff]  ;;  %v19_v1 = vld [vmem:[%s278_s0 + $0x8] sm:$0xff]  ;;  %v181_v14 = vld [vmem:[%s279_s3 + $0x34] ss:$8 sps:$4 sm:$0xff]   ;;  %150 = vmatprep.mubr.bf16.mxu0 %v197_v15 }
   0x2   :  { %v21_v2 = vsel %vm20_vm0, %v18_v0, 0.0  ;;  %v24_v3 = vsel %vm20_vm0, %v19_v1, 0.0  ;;  %v183_v16 = vld [vmem:[%s279_s3 + $0x30] ss:$8 sps:$4 sm:$0xff]   ;;  %126 = vmatprep.subr.bf16.mxu0 %v181_v14  ;;  %v184_v17 = vld [vmem:[%s279_s3 + $0x24] ss:$8 sps:$4 sm:$0xff]  }
   0x3   :  { %22 = vadd.xlane.f32.xlu0 %v21_v2  ;;  %127 = vmatpush1.bf16.msra.mxu0 %v183_v16  ;;  %v186_v18 = vld [vmem:[%s279_s3 + $0x20] ss:$8 sps:$4 sm:$0xff]   ;;  %v187_v19 = vld [vmem:[%s279_s3 + $0x14] ss:$8 sps:$4 sm:$0xff]   ;;  %v189_v20 = vld [vmem:[%s279_s3 + $0x10] ss:$8 sps:$4 sm:$0xff]  }
   0x4   :  { %128 = vmatprep.subr.bf16.mxu0 %v184_v17  ;;  %v190_v21 = vld [vmem:[%s279_s3 + $0x4] ss:$8 sps:$4 sm:$0xff]   ;;  %v192_v22 = vld [vmem:[%s279_s3] ss:$8 sps:$4 sm:$0xff]  }
   0x5   :  { %v169_v31 = vld [vmem:[%s280_s1] ss:$0 sm:$0xff] }
   0x6   :  { %v170_v35 = vld [vmem:[%s281_s2] ss:$0 sm:$0xff] }
   0x7   :  { %25 = vadd.xlane.f32.xlu0 %v24_v3  ;;  %129 = vmatpush1.bf16.msra.mxu0 %v186_v18 }
   0x8   :  { %130 = vmatprep.subr.bf16.mxu0 %v187_v19 }
   0xb   :  { %131 = vmatpush1.bf16.msra.mxu0 %v189_v20 }
   0xc   :  { %132 = vmatprep.subr.bf16.mxu0 %v190_v21 }
   0xf   :  { %133 = vmatpush1.bf16.msra.mxu0 %v192_v22 }
  0x8c   :  { %v23_v4 = vpop.xlane.xlu0 %22 }
  0x8d   :  { %v28_v5 = vmul.f32 0.015625, %v23_v4 }
  0x8f   :  { %v30_v6 = vsub.f32 %v18_v0, %v28_v5 }
  0x90   :  { %v26_v7 = vpop.xlane.xlu0 %25 }
  0x91   :  { %v29_v8 = vmul.f32 0.015625, %v26_v7  ;;  %v32_v9 = vmul.f32 %v30_v6, %v30_v6 }
  0x93   :  { %v31_v10 = vsub.f32 %v19_v1, %v29_v8  ;;  %v34_v11 = vsel %vm20_vm0, %v32_v9, 0.0 }
  0x94   :  { %35 = vadd.xlane.f32.xlu1 %v34_v11 }
  0x95   :  { %v33_v12 = vmul.f32 %v31_v10, %v31_v10 }
  0x97   :  { %v37_v13 = vsel %vm20_vm0, %v33_v12, 0.0 }
  0x98   :  { %38 = vadd.xlane.f32.xlu1 %v37_v13 }
 0x11d   :  { %v36_v23 = vpop.xlane.xlu1 %35 }
 0x11e   :  { %v40_v24 = vmul.f32 0.015625, %v36_v23 }
 0x120   :  { %v42_v25 = vadd.f32 1e-05, %v40_v24 }
 0x121   :  { %v39_v26 = vpop.xlane.xlu1 %38 }
 0x122   :  { %193 = vrsqrt.f32 %v42_v25  ;;  %v41_v27 = vmul.f32 0.015625, %v39_v26 }
 0x124   :  { %v43_v28 = vadd.f32 1e-05, %v41_v27 }
 0x126   :  { %195 = vrsqrt.f32 %v43_v28 }
 0x12f   :  { %v194_v29 = vpop.eup %193 }
 0x130   :  { %v46_v30 = vmul.f32 %v194_v29, %v30_v6 }
 0x132   :  { %v55_v34 = vmul.f32 %v169_v31, %v46_v30 }
 0x133   :  { %v196_v32 = vpop.eup %195 }
 0x134   :  { %v47_v33 = vmul.f32 %v196_v32, %v31_v10  ;;  %v64_v37 = vadd.f32 %v170_v35, %v55_v34 }
 0x136   :  { %v56_v36 = vmul.f32 %v169_v31, %v47_v33 }
 0x138   :  { %v65_v38 = vadd.f32 %v170_v35, %v56_v36 }
 0x13a   :  { %v66_v39 = vpack.c.bf16 %v65_v38, %v64_v37 }
 0x13c   :  { %179 = vmatmul.mubr.msk.bf16.vlgmr.msra.gmra.mxu0 %vm20_vm0, %v66_v39 }
 0x1fc   :  { %v152_v40 = vpop.f32.mrf.mxu0 }
 0x1fd   :  { %161 = vst [vmem:[%s282_s4] sm:$0xff] %v152_v40 }
 0x1fe   :  { %v154_v41 = vpop.f32.mrf.mxu0 }
 0x1ff   :  { %162 = vst.msk [vmem:[%s282_s4 + $0x8] sm:$0xff] %vm20_vm0, %v154_v41 }
 0x200   :  { %v156_v42 = vpop.f32.mrf.mxu0 }
 0x201   :  { %163 = vst [vmem:[%s282_s4 + $0x10] sm:$0xff] %v156_v42 }
 0x202   :  { %v158_v43 = vpop.f32.mrf.mxu0 }
 0x203   :  { %164 = vst.msk [vmem:[%s282_s4 + $0x18] sm:$0xff] %vm20_vm0, %v158_v43 }

// kernel: cross_attention_gpt2_forward.22
= control target key start
LH: loop header
LB: loop body
LE: loop exit
PB: predicated region body
PF: predicated region fallthrough
CT: control target
= control target key end

     0   :  { %s792_s6 = smov 0   ;;  %s893_s0 = inlined_call_operand.vmem [shape: f32[2,8,192], index: 0, kind: input, shape index: {}]   ;;  %s894_s1 = inlined_call_operand.vmem [shape: f32[2,8,64], index: 1, kind: output, shape index: {}]  }
   0x1 LB: > { %s647_s7 = sadd.s32 4294967295, %s770_s6   ;;  %p651_p0 = scmp.ge.s32.totalorder %s770_s6, 1  ;;  %s770_s6 = sphi %s792_s6, %s11_s6  }
   0x2   : > { %p87_p1 = scmp.lt.s32.totalorder %s770_s6, 3 }
   0x4   : > { %p88_p2 = pnand %p651_p0, %p87_p1 }
   0x5   : > { %p106_p3 = scmp.lt.s32.totalorder (!%p88_p2), %s647_s7, 1  ;;  %s774_s12 = smov (!%p88_p2), 64  }
   0x6   : > { %91 = sbr.rel (%p88_p2) target bundleno = 1496 (0x5d8), region = 24  ;;  %s775_s13 = smov (!%p88_p2), 48  }
   0x7   : > { %s777_s14 = smov (!%p88_p2), 80   ;;  %s778_s15 = smov (!%p88_p2), 112  }
   0x8   : > { %s779_s16 = smov (!%p88_p2), 32   ;;  %s780_s17 = smov (!%p88_p2), 96  }
   0x9   : > { %s781_s18 = smov (!%p88_p2), 16  }
   0xb   : > { %v772_v0 = vmov 0.0   ;;  %vm773_vm0 = vmmov 0   ;;  %s896_s7 = smov (!%p106_p3, %s647_s7), 1  ;;  %vm129_vm1 = vcmask 130048   ;;  %v118_v5 = vlaneseq }
   0xc   : > { %682 = vmatprep.subr.bf16.mxu0 %v772_v0  ;;  %684 = vmatprep.mubr.msk.bf16.mxu0 %vm773_vm0, %v772_v0  ;;  %s665_s8 = sshll.u32 %s896_s7, 4  ;;  %v776_v9 = vmov -1e+30   ;;  %vm178_vm3 = vcmask 64512   ;;  %vm194_vm4 = vcmask 1043456   ;;  %s654_s19 = sshll.u32 %s896_s7, 3 }
   0xd   : > { %688 = vmatprep.subr.bf16.mxu1 %v772_v0  ;;  %690 = vmatprep.mubr.msk.bf16.mxu1 %vm773_vm0, %v772_v0  ;;  %s812_s11 = scalar_lea.vmem %s893_s0, %s665_s8  ;;  %v119_v6 = vshrl.u32 %v118_v5, 7  ;;  %v121_v7 = vand.u32 127, %v118_v5  ;;  %vm588_vm5 = vcmask 261120   ;;  %vm590_vm6 = vcmask 392192   ;;  %s114_s22 = scalar_lea.vmem %s894_s1, %s654_s19 }
   0xe   : > { %v116_v1 = vld [vmem:[%s812_s11] sm:$0xff]  ;;  %v117_v22 = vld [vmem:[%s812_s11 + $0x8] sm:$0xff]  ;;  %vm592_vm7 = vcmask 523264  }
   0xf   : > { %v124_v2 = vpack.c.bf16 %v116_v1, %v116_v1  ;;  %vm122_vm2 = vcmp.le.s32.totalorder %v121_v7, %v119_v6  ;;  %v828_v23 = vpack.c.bf16 %v117_v22, %v117_v22 }
  0x10   : > { %v821_v10 = vsel %vm122_vm2, 0.0, %v776_v9 }
  0x11   : > { %127 = vrot.lane.b32.xlu0 %v124_v2, %s774_s12  ;;  %240 = vrot.lane.b32.xlu1 %v124_v2, %s775_s13  ;;  %v196_v24 = vsel %vm194_vm4, %v828_v23, 0 }
  0x12   : > { %689 = vmatpush3.bf16.msra.mxu1 %v196_v24 }
  0x13   : > { %694 = vmatprep.subr.bf16.mxu1 %v772_v0 }
  0x83   : > { %v128_v3 = vpop.permute.xlu0 %127  ;;  %v241_v25 = vpop.permute.xlu1 %240 }
  0x84   : > { %v134_v4 = vsel %vm129_vm1, %v128_v3, 0  ;;  %v246_v32 = vsel %vm129_vm1, %v241_v25, 0 }
  0x85   : > { %683 = vmatpush3.bf16.xpose.msra.mxu0 %v134_v4 }
  0x86   : > { %700 = vmatprep.subr.bf16.mxu0 %v772_v0 }
  0x8c   : > { %685 = vmatmul.mubr.msk.bf16.vlgmr.msra.gmra.mxu0 %vm129_vm1, %v124_v2 }
  0x8d   : > { %702 = vmatprep.mubr.msk.bf16.mxu0 %vm773_vm0, %v772_v0 }
 0x14c   : > { %v170_v8 = vpop.f32.mrf.mxu0 }
 0x14d   : > { %v176_v11 = vmul.f32 0.25, %v170_v8 }
 0x14e   : > { %v686_v12 = vpop.f32.mrf.mxu0 }
 0x14f   : > { %v177_v13 = vadd.f32 %v176_v11, %v821_v10 }
 0x150   : > { %v173_v14 = vpop.f32.mrf.mxu0 }
 0x151   : > { %v179_v15 = vsel %vm178_vm3, %v177_v13, -inf }
 0x152   : > { %180 = vmax.xlane.f32.xlu0 %v179_v15  ;;  %v687_v16 = vpop.f32.mrf.mxu0 }
 0x168   : > { %463 = vrot.lane.b32.xlu0 %v124_v2, %s777_s14 }
 0x1db   : > { %v181_v17 = vpop.xlane.xlu0 %180 }
 0x1dc   : > { %v182_v18 = vsub.f32 %v177_v13, %v181_v17 }
 0x1de   : > { %v183_v19 = vmul.f32 1.442695, %v182_v18 }
 0x1df   : > { %v464_v37 = vpop.permute.xlu0 %463 }
 0x1e0   : > { %748 = vpow2.f32 %v183_v19 }
 0x1ed   : > { %v749_v20 = vpop.eup %748 }
 0x1ee   : > { %v185_v21 = vsel %vm178_vm3, %v749_v20, 0.0 }
 0x1ef   : > { %186 = vadd.xlane.f32.xlu1 %v185_v21 }
 0x200   : > { %238 = vrot.lane.b32.xlu1 %v124_v2, %s778_s15 }
 0x204   : > { %353 = vrot.lane.b32.xlu1 %v124_v2, %s779_s16 }
 0x208   : > { %351 = vrot.lane.b32.xlu1 %v124_v2, %s780_s17 }
 0x20c   : > { %465 = vrot.lane.b32.xlu1 %v124_v2, %s781_s18 }
 0x278   : > { %v187_v26 = vpop.xlane.xlu1 %186 }
 0x279   : > { %750 = vrcp.f32 %v187_v26 }
 0x27c   : > { %v239_v27 = vpop.permute.xlu1 %238 }
 0x280   : > { %v354_v31 = vpop.permute.xlu1 %353 }
 0x281   : > { %v359_v34 = vsel %vm129_vm1, %v354_v31, 0 }
 0x284   : > { %v352_v33 = vpop.permute.xlu1 %351 }
 0x286   : > { %v751_v28 = vpop.eup %750 }
 0x287   : > { %v189_v29 = vmul.f32 %v751_v28, %v749_v20 }
 0x288   : > { %v466_v35 = vpop.permute.xlu1 %465 }
 0x289   : > { %v190_v30 = vpack.c.bf16 %v189_v29, %v189_v29  ;;  %v471_v36 = vsel %vm129_vm1, %v466_v35, 0 }
 0x28b   : > { %691 = vmatmul.mubr.msk.bf16.vlgmr.msra.gmra.mxu1 %vm178_vm3, %v190_v30 }
 0x28c   : > { %695 = vmatpush3.bf16.xpose.msra.mxu1 %v246_v32  ;;  %696 = vmatprep.mubr.msk.bf16.mxu1 %vm773_vm0, %v772_v0 }
 0x28d   : > { %706 = vmatprep.subr.bf16.mxu1 %v772_v0 }
 0x293   : > { %697 = vmatmul.mubr.msk.bf16.vlgmr.msra.gmra.mxu1 %vm129_vm1, %v239_v27 }
 0x294   : > { %707 = vmatpush3.bf16.xpose.msra.mxu1 %v359_v34  ;;  %708 = vmatprep.mubr.msk.bf16.mxu1 %vm773_vm0, %v772_v0 }
 0x295   : > { %718 = vmatprep.subr.bf16.mxu1 %v772_v0 }
 0x29b   : > { %709 = vmatmul.mubr.msk.bf16.vlgmr.msra.gmra.mxu1 %vm129_vm1, %v352_v33 }
 0x29c   : > { %719 = vmatpush3.bf16.xpose.msra.mxu1 %v471_v36  ;;  %720 = vmatprep.mubr.msk.bf16.mxu1 %vm773_vm0, %v772_v0 }
 0x2a3   : > { %721 = vmatmul.mubr.msk.bf16.vlgmr.msra.gmra.mxu1 %vm129_vm1, %v464_v37 }
 0x34b   : > { %v852_v38 = vpop.f32.mrf.mxu1 }
 0x34d   : > { %v692_v39 = vpop.f32.mrf.mxu1 }
 0x34f   : > { %v235_v40 = vpop.f32.mrf.mxu1 }
 0x351   : > { %v693_v41 = vpop.f32.mrf.mxu1 }
 0x353   : > { %v282_v42 = vpop.f32.mrf.mxu1 }
 0x354   : > { %v288_v43 = vmul.f32 0.25, %v282_v42 }
 0x355   : > { %v698_v44 = vpop.f32.mrf.mxu1 }
 0x356   : > { %v289_v45 = vadd.f32 %v288_v43, %v821_v10 }
 0x357   : > { %v285_v46 = vpop.f32.mrf.mxu1 }
 0x358   : > { %v290_v47 = vsel %vm178_vm3, %v289_v45, -inf }
 0x359   : > { %291 = vmax.xlane.f32.xlu1 %v290_v47  ;;  %v699_v48 = vpop.f32.mrf.mxu1 }
 0x35b   : > { %v395_v49 = vpop.f32.mrf.mxu1 }
 0x35c   : > { %v401_v50 = vmul.f32 0.25, %v395_v49 }
 0x35d   : > { %v710_v51 = vpop.f32.mrf.mxu1 }
 0x35e   : > { %v402_v52 = vadd.f32 %v401_v50, %v821_v10 }
 0x35f   : > { %v398_v53 = vpop.f32.mrf.mxu1 }
 0x360   : > { %v403_v54 = vsel %vm178_vm3, %v402_v52, -inf }
 0x361   : > { %404 = vmax.xlane.f32.xlu0 %v403_v54  ;;  %v711_v55 = vpop.f32.mrf.mxu1 }
 0x363   : > { %v507_v56 = vpop.f32.mrf.mxu1 }
 0x364   : > { %v513_v57 = vmul.f32 0.25, %v507_v56 }
 0x365   : > { %v722_v58 = vpop.f32.mrf.mxu1 }
 0x366   : > { %v514_v59 = vadd.f32 %v513_v57, %v821_v10 }
 0x367   : > { %v510_v60 = vpop.f32.mrf.mxu1 }
 0x368   : > { %v515_v61 = vsel %vm178_vm3, %v514_v59, -inf }
 0x369   : > { %516 = vmax.xlane.f32.xlu1 %v515_v61  ;;  %v723_v62 = vpop.f32.mrf.mxu1 }
 0x377   : > { %303 = vrot.lane.b32.xlu0 %v828_v23, %s778_s15 }
 0x37a   : > { %415 = vrot.lane.b32.xlu1 %v828_v23, %s780_s17 }
 0x3e2   : > { %v292_v63 = vpop.xlane.xlu1 %291 }
 0x3e3   : > { %v293_v1 = vsub.f32 %v289_v45, %v292_v63 }
 0x3e5   : > { %v294_v2 = vmul.f32 1.442695, %v293_v1 }
 0x3e7   : > { %752 = vpow2.f32 %v294_v2 }
 0x3ea   : > { %v405_v3 = vpop.xlane.xlu0 %404 }
 0x3eb   : > { %v406_v4 = vsub.f32 %v402_v52, %v405_v3 }
 0x3ed   : > { %v407_v5 = vmul.f32 1.442695, %v406_v4 }
 0x3ee   : > { %v304_v15 = vpop.permute.xlu0 %303 }
 0x3ef   : > { %754 = vpow2.f32 %v407_v5  ;;  %v309_v16 = vsel %vm194_vm4, %v304_v15, 0 }
 0x3f0   : > { %701 = vmatpush3.bf16.msra.mxu0 %v309_v16 }
 0x3f1   : > { %712 = vmatprep.subr.bf16.mxu0 %v772_v0 }
 0x3f2   : > { %v517_v6 = vpop.xlane.xlu1 %516 }
 0x3f3   : > { %v518_v7 = vsub.f32 %v514_v59, %v517_v6 }
 0x3f4   : > { %v753_v8 = vpop.eup %752 }
 0x3f5   : > { %v519_v9 = vmul.f32 1.442695, %v518_v7  ;;  %v296_v10 = vsel %vm178_vm3, %v753_v8, 0.0 }
 0x3f6   : > { %297 = vadd.xlane.f32.xlu1 %v296_v10  ;;  %v416_v17 = vpop.permute.xlu1 %415 }
 0x3f7   : > { %756 = vpow2.f32 %v519_v9  ;;  %v421_v25 = vsel %vm194_vm4, %v416_v17, 0 }
 0x3fc   : > { %v755_v11 = vpop.eup %754 }
 0x3fd   : > { %v409_v12 = vsel %vm178_vm3, %v755_v11, 0.0 }
 0x3fe   : > { %410 = vadd.xlane.f32.xlu1 %v409_v12 }
 0x404   : > { %v757_v13 = vpop.eup %756 }
 0x405   : > { %v521_v14 = vsel %vm178_vm3, %v757_v13, 0.0 }
 0x406   : > { %522 = vadd.xlane.f32.xlu1 %v521_v14 }
 0x417   : > { %527 = vrot.lane.b32.xlu1 %v828_v23, %s777_s14 }
 0x47f   : > { %v298_v18 = vpop.xlane.xlu1 %297 }
 0x480   : > { %758 = vrcp.f32 %v298_v18 }
 0x487   : > { %v411_v19 = vpop.xlane.xlu1 %410 }
 0x488   : > { %760 = vrcp.f32 %v411_v19 }
 0x48d   : > { %v759_v20 = vpop.eup %758 }
 0x48e   : > { %v300_v21 = vmul.f32 %v759_v20, %v753_v8 }
 0x48f   : > { %v523_v22 = vpop.xlane.xlu1 %522 }
 0x490   : > { %762 = vrcp.f32 %v523_v22  ;;  %v301_v24 = vpack.c.bf16 %v300_v21, %v300_v21 }
 0x492   : > { %703 = vmatmul.mubr.msk.bf16.vlgmr.msra.gmra.mxu0 %vm178_vm3, %v301_v24 }
 0x493   : > { %713 = vmatpush3.bf16.msra.mxu0 %v421_v25  ;;  %714 = vmatprep.mubr.msk.bf16.mxu0 %vm773_vm0, %v772_v0  ;;  %v528_v26 = vpop.permute.xlu1 %527 }
 0x494   : > { %724 = vmatprep.subr.bf16.mxu0 %v772_v0  ;;  %v533_v28 = vsel %vm194_vm4, %v528_v26, 0 }
 0x495   : > { %v761_v23 = vpop.eup %760 }
 0x496   : > { %v413_v27 = vmul.f32 %v761_v23, %v755_v11 }
 0x498   : > { %v414_v29 = vpack.c.bf16 %v413_v27, %v413_v27 }
 0x49a   : > { %715 = vmatmul.mubr.msk.bf16.vlgmr.msra.gmra.mxu0 %vm178_vm3, %v414_v29 }
 0x49b   : > { %725 = vmatpush3.bf16.msra.mxu0 %v533_v28  ;;  %726 = vmatprep.mubr.msk.bf16.mxu0 %vm773_vm0, %v772_v0 }
 0x49d   : > { %v763_v30 = vpop.eup %762 }
 0x49e   : > { %v525_v31 = vmul.f32 %v763_v30, %v757_v13 }
 0x4a0   : > { %v526_v32 = vpack.c.bf16 %v525_v31, %v525_v31 }
 0x4a2   : > { %727 = vmatmul.mubr.msk.bf16.vlgmr.msra.gmra.mxu0 %vm178_vm3, %v526_v32 }
 0x552   : > { %v345_v33 = vpop.f32.mrf.mxu0 }
 0x553   : > { %576 = vrot.lane.b32.xlu0 %v345_v33, %s781_s18 }
 0x554   : > { %v704_v34 = vpop.f32.mrf.mxu0 }
 0x556   : > { %v348_v35 = vpop.f32.mrf.mxu0 }
 0x558   : > { %v705_v36 = vpop.f32.mrf.mxu0 }
 0x55a   : > { %v457_v37 = vpop.f32.mrf.mxu0 }
 0x55b   : > { %580 = vrot.lane.b32.xlu1 %v457_v37, %s779_s16 }
 0x55c   : > { %v716_v39 = vpop.f32.mrf.mxu0 }
 0x55e   : > { %v460_v40 = vpop.f32.mrf.mxu0 }
 0x560   : > { %v717_v41 = vpop.f32.mrf.mxu0 }
 0x562   : > { %v569_v42 = vpop.f32.mrf.mxu0 }
 0x563   : > { %584 = vrot.lane.b32.xlu0 %v569_v42, %s775_s13 }
 0x564   : > { %v728_v0 = vpop.f32.mrf.mxu0 }
 0x566   : > { %v572_v43 = vpop.f32.mrf.mxu0 }
 0x568   : > { %v729_v44 = vpop.f32.mrf.mxu0 }
 0x5c5   : > { %v577_v45 = vpop.permute.xlu0 %576 }
 0x5c6   : > { %v587_v47 = vsel %vm129_vm1, %v852_v38, %v577_v45 }
 0x5cd   : > { %v581_v46 = vpop.permute.xlu1 %580 }
 0x5ce   : > { %v589_v48 = vsel %vm588_vm5, %v587_v47, %v581_v46 }
 0x5d5   : > { %v585_v49 = vpop.permute.xlu0 %584 }
 0x5d6   : > { %v591_v50 = vsel %vm590_vm6, %v589_v48, %v585_v49 }
 0x5d7   : > { %593 = vst.msk [vmem:[%s114_s22] sm:$0xff] %vm592_vm7, %v591_v50 }
 0x5d8 PF: > { %s11_s6 = sadd.s32 1, %s770_s6  }
 0x5d9   : > { %p8_p4 = scmp.ge.s32.totalorder %s11_s6, 4  }
 0x5db   :  { %10 = sbr.rel (!%p8_p4) target bundleno = 1 (0x1), region = 54 }

// kernel: cross_attention_gpt2_forward.25
= control target key start
LH: loop header
LB: loop body
LE: loop exit
PB: predicated region body
PF: predicated region fallthrough
CT: control target
= control target key end

     0   :  { %v126_v0 = vmov 0.0   ;;  %vm127_vm0 = vmmov 0   ;;  %vm47_vm1 = vcmask 523264   ;;  %s167_s1 = inlined_call_operand.vmem [shape: bf16[64,128], index: 1, kind: input, shape index: {}]   ;;  %s168_s0 = inlined_call_operand.vmem [shape: f32[16,64], index: 0, kind: input, shape index: {}]   ;;  %s169_s2 = inlined_call_operand.vmem [shape: f32[16,128], index: 2, kind: output, shape index: {}]  }
   0x1   :  { %108 = vmatprep.subr.bf16.mxu0 %v126_v0  ;;  %v122_v1 = vld [vmem:[%s167_s1 + $0x18] sm:$0xff]   ;;  %116 = vmatprep.mubr.msk.bf16.mxu0 %vm127_vm0, %v126_v0  ;;  %v123_v2 = vld [vmem:[%s167_s1 + $0x10] sm:$0xff]   ;;  %v124_v3 = vld [vmem:[%s167_s1 + $0x8] sm:$0xff]  }
   0x2   :  { %109 = vmatpush3.bf16.msra.mxu0 %v122_v1  ;;  %v125_v4 = vld [vmem:[%s167_s1] sm:$0xff]   ;;  %v13_v6 = vld [vmem:[%s168_s0 + $0x8] sm:$0xff] }
   0x3   :  { %110 = vmatprep.subr.bf16.mxu0 %v126_v0  ;;  %v12_v5 = vld [vmem:[%s168_s0] sm:$0xff] }
   0x4   :  { %v14_v7 = vpack.c.bf16 %v13_v6, %v12_v5 }
   0x6   :  { %111 = vmatpush3.bf16.msra.mxu0 %v123_v2 }
   0x7   :  { %112 = vmatprep.subr.bf16.mxu0 %v126_v0 }
   0xa   :  { %113 = vmatpush3.bf16.msra.mxu0 %v124_v3 }
   0xb   :  { %114 = vmatprep.subr.bf16.mxu0 %v126_v0 }
   0xe   :  { %115 = vmatpush3.bf16.msra.mxu0 %v125_v4 }
  0x11   :  { %117 = vmatmul.mubr.msk.bf16.vlgmr.msra.gmra.mxu0 %vm47_vm1, %v14_v7 }
  0xd1   :  { %v85_v8 = vpop.f32.mrf.mxu0 }
  0xd2   :  { %92 = vst [vmem:[%s169_s2] sm:$0xff] %v85_v8 }
  0xd3   :  { %v118_v9 = vpop.f32.mrf.mxu0 }
  0xd5   :  { %v88_v10 = vpop.f32.mrf.mxu0 }
  0xd6   :  { %93 = vst [vmem:[%s169_s2 + $0x8] sm:$0xff] %v88_v10 }
  0xd7   :  { %v119_v11 = vpop.f32.mrf.mxu0 }

// kernel: cross_attention_gpt2_forward.26
= control target key start
LH: loop header
LB: loop body
LE: loop exit
PB: predicated region body
PF: predicated region fallthrough
CT: control target
= control target key end

     0   :  { %s837_s9 = smov 0   ;;  %s930_s0 = inlined_call_operand.vmem [shape: f32[2,8,64], index: 0, kind: input, shape index: {}]   ;;  %s931_s1 = inlined_call_operand.vmem [shape: f32[2,8,128], index: 1, kind: input, shape index: {}]   ;;  %s932_s2 = inlined_call_operand.vmem [shape: f32[2,8,64], index: 2, kind: output, shape index: {}]  }
   0x1 LB: > { %s690_s10 = sadd.s32 4294967295, %s811_s9   ;;  %p694_p0 = scmp.ge.s32.totalorder %s811_s9, 1  ;;  %s811_s9 = sphi %s837_s9, %s12_s9  }
   0x2   : > { %p120_p1 = scmp.lt.s32.totalorder %s811_s9, 3 }
   0x4   : > { %p121_p2 = pnand %p694_p0, %p120_p1 }
   0x5   : > { %p144_p3 = scmp.lt.s32.totalorder (!%p121_p2), %s690_s10, 1  ;;  %s815_s18 = smov (!%p121_p2), 64  }
   0x6   : > { %124 = sbr.rel (%p121_p2) target bundleno = 1377 (0x561), region = 28  ;;  %s816_s19 = smov (!%p121_p2), 112  }
   0x7   : > { %s817_s20 = smov (!%p121_p2), 96   ;;  %s818_s21 = smov (!%p121_p2), 80  }
   0x8   : > { %s819_s22 = smov (!%p121_p2), 48   ;;  %s820_s23 = smov (!%p121_p2), 16  }
   0x9   : > { %s821_s24 = smov (!%p121_p2), 32  }
   0xb   : > { %v813_v0 = vmov 0.0   ;;  %vm814_vm0 = vmmov 0   ;;  %s934_s10 = smov (!%p144_p3, %s690_s10), 1  ;;  %vm161_vm1 = vcmask 130048   ;;  %vm209_vm2 = vcmask 64512  }
   0xc   : > { %724 = vmatprep.subr.bf16.mxu0 %v813_v0  ;;  %726 = vmatprep.mubr.msk.bf16.mxu0 %vm814_vm0, %v813_v0  ;;  %s851_s11 = sshll.u32 %s934_s10, 3  ;;  %vm228_vm3 = vcmask 1043456   ;;  %vm619_vm4 = vcmask 261120   ;;  %vm621_vm5 = vcmask 392192   ;;  %vm623_vm6 = vcmask 523264  }
   0xd   : > { %730 = vmatprep.subr.bf16.mxu1 %v813_v0  ;;  %732 = vmatprep.mubr.msk.bf16.mxu1 %vm814_vm0, %v813_v0  ;;  %s151_s14 = scalar_lea.vmem %s931_s1, %s851_s11  ;;  %s147_s17 = scalar_lea.vmem %s930_s0, %s851_s11 }
   0xe   : > { %v158_v1 = vld [vmem:[%s151_s14] sm:$0xff]  ;;  %s155_s27 = scalar_lea.vmem %s932_s2, %s851_s11 }
   0xf   : > { %v857_v2 = vpack.c.bf16 %v158_v1, %v158_v1  ;;  %v157_v4 = vld [vmem:[%s147_s17] sm:$0xff] }
  0x10   : > { %v159_v5 = vpack.c.bf16 %v157_v4, %v157_v4 }
  0x11   : > { %v166_v3 = vsel %vm161_vm1, %v857_v2, 0  ;;  %223 = vrot.lane.b32.xlu1 %v857_v2, %s815_s18 }
  0x12   : > { %725 = vmatpush3.bf16.xpose.msra.mxu0 %v166_v3 }
  0x13   : > { %742 = vmatprep.subr.bf16.mxu0 %v813_v0 }
  0x15   : > { %275 = vrot.lane.b32.xlu1 %v857_v2, %s816_s19 }
  0x19   : > { %727 = vmatmul.mubr.msk.bf16.vlgmr.msra.gmra.mxu0 %vm161_vm1, %v159_v5  ;;  %386 = vrot.lane.b32.xlu1 %v857_v2, %s817_s20 }
  0x1a   : > { %744 = vmatprep.mubr.msk.bf16.mxu0 %vm814_vm0, %v813_v0 }
  0x1d   : > { %384 = vrot.lane.b32.xlu1 %v159_v5, %s817_s20 }
  0x21   : > { %497 = vrot.lane.b32.xlu1 %v857_v2, %s818_s21 }
  0x25   : > { %495 = vrot.lane.b32.xlu1 %v159_v5, %s818_s21 }
  0x83   : > { %v224_v17 = vpop.permute.xlu1 %223 }
  0x84   : > { %v230_v18 = vsel %vm228_vm3, %v224_v17, 0 }
  0x85   : > { %731 = vmatpush3.bf16.msra.mxu1 %v230_v18 }
  0x86   : > { %736 = vmatprep.subr.bf16.mxu1 %v813_v0 }
  0x87   : > { %v276_v21 = vpop.permute.xlu1 %275 }
  0x88   : > { %v281_v23 = vsel %vm161_vm1, %v276_v21, 0 }
  0x8b   : > { %v387_v25 = vpop.permute.xlu1 %386 }
  0x8c   : > { %v392_v28 = vsel %vm161_vm1, %v387_v25, 0 }
  0x8f   : > { %v385_v27 = vpop.permute.xlu1 %384 }
  0x93   : > { %v498_v29 = vpop.permute.xlu1 %497 }
  0x94   : > { %v503_v30 = vsel %vm161_vm1, %v498_v29, 0 }
  0x97   : > { %v496_v31 = vpop.permute.xlu1 %495 }
  0xd9   : > { %v202_v6 = vpop.f32.mrf.mxu0 }
  0xda   : > { %v208_v7 = vmul.f32 0.25, %v202_v6 }
  0xdb   : > { %v728_v8 = vpop.f32.mrf.mxu0 }
  0xdc   : > { %v210_v9 = vsel %vm209_vm2, %v208_v7, -inf }
  0xdd   : > { %211 = vmax.xlane.f32.xlu0 %v210_v9  ;;  %v205_v10 = vpop.f32.mrf.mxu0 }
  0xdf   : > { %v729_v11 = vpop.f32.mrf.mxu0 }
 0x166   : > { %v212_v12 = vpop.xlane.xlu0 %211 }
 0x167   : > { %v213_v13 = vsub.f32 %v208_v7, %v212_v12 }
 0x169   : > { %v214_v14 = vmul.f32 1.442695, %v213_v13 }
 0x16b   : > { %789 = vpow2.f32 %v214_v14 }
 0x178   : > { %v790_v15 = vpop.eup %789 }
 0x179   : > { %v216_v16 = vsel %vm209_vm2, %v790_v15, 0.0 }
 0x17a   : > { %217 = vadd.xlane.f32.xlu0 %v216_v16 }
 0x190   : > { %273 = vrot.lane.b32.xlu0 %v159_v5, %s816_s19 }
 0x203   : > { %v218_v19 = vpop.xlane.xlu0 %217 }
 0x204   : > { %791 = vrcp.f32 %v218_v19 }
 0x207   : > { %v274_v26 = vpop.permute.xlu0 %273 }
 0x211   : > { %v792_v20 = vpop.eup %791 }
 0x212   : > { %v220_v22 = vmul.f32 %v792_v20, %v790_v15 }
 0x214   : > { %v221_v24 = vpack.c.bf16 %v220_v22, %v220_v22 }
 0x216   : > { %733 = vmatmul.mubr.msk.bf16.vlgmr.msra.gmra.mxu1 %vm209_vm2, %v221_v24 }
 0x217   : > { %737 = vmatpush3.bf16.xpose.msra.mxu1 %v281_v23  ;;  %738 = vmatprep.mubr.msk.bf16.mxu1 %vm814_vm0, %v813_v0 }
 0x218   : > { %748 = vmatprep.subr.bf16.mxu1 %v813_v0 }
 0x21e   : > { %739 = vmatmul.mubr.msk.bf16.vlgmr.msra.gmra.mxu1 %vm161_vm1, %v274_v26 }
 0x21f   : > { %749 = vmatpush3.bf16.xpose.msra.mxu1 %v392_v28  ;;  %750 = vmatprep.mubr.msk.bf16.mxu1 %vm814_vm0, %v813_v0 }
 0x220   : > { %760 = vmatprep.subr.bf16.mxu1 %v813_v0 }
 0x226   : > { %751 = vmatmul.mubr.msk.bf16.vlgmr.msra.gmra.mxu1 %vm161_vm1, %v385_v27 }
 0x227   : > { %761 = vmatpush3.bf16.xpose.msra.mxu1 %v503_v30  ;;  %762 = vmatprep.mubr.msk.bf16.mxu1 %vm814_vm0, %v813_v0 }
 0x22e   : > { %763 = vmatmul.mubr.msk.bf16.vlgmr.msra.gmra.mxu1 %vm161_vm1, %v496_v31 }
 0x2d6   : > { %v892_v32 = vpop.f32.mrf.mxu1 }
 0x2d8   : > { %v734_v33 = vpop.f32.mrf.mxu1 }
 0x2da   : > { %v269_v34 = vpop.f32.mrf.mxu1 }
 0x2dc   : > { %v735_v35 = vpop.f32.mrf.mxu1 }
 0x2de   : > { %v317_v36 = vpop.f32.mrf.mxu1 }
 0x2df   : > { %v323_v37 = vmul.f32 0.25, %v317_v36 }
 0x2e0   : > { %v740_v38 = vpop.f32.mrf.mxu1 }
 0x2e1   : > { %v324_v39 = vsel %vm209_vm2, %v323_v37, -inf }
 0x2e2   : > { %325 = vmax.xlane.f32.xlu1 %v324_v39  ;;  %v320_v40 = vpop.f32.mrf.mxu1 }
 0x2e4   : > { %v741_v41 = vpop.f32.mrf.mxu1 }
 0x2e6   : > { %v428_v42 = vpop.f32.mrf.mxu1 }
 0x2e7   : > { %v434_v43 = vmul.f32 0.25, %v428_v42 }
 0x2e8   : > { %v752_v44 = vpop.f32.mrf.mxu1 }
 0x2e9   : > { %v435_v45 = vsel %vm209_vm2, %v434_v43, -inf }
 0x2ea   : > { %436 = vmax.xlane.f32.xlu0 %v435_v45  ;;  %v431_v46 = vpop.f32.mrf.mxu1 }
 0x2ec   : > { %v753_v47 = vpop.f32.mrf.mxu1 }
 0x2ee   : > { %v539_v48 = vpop.f32.mrf.mxu1 }
 0x2ef   : > { %v545_v49 = vmul.f32 0.25, %v539_v48 }
 0x2f0   : > { %v764_v50 = vpop.f32.mrf.mxu1 }
 0x2f1   : > { %v546_v51 = vsel %vm209_vm2, %v545_v49, -inf }
 0x2f2   : > { %547 = vmax.xlane.f32.xlu1 %v546_v51  ;;  %v542_v52 = vpop.f32.mrf.mxu1 }
 0x2f4   : > { %v765_v53 = vpop.f32.mrf.mxu1 }
 0x303   : > { %336 = vrot.lane.b32.xlu1 %v857_v2, %s819_s22 }
 0x36b   : > { %v326_v54 = vpop.xlane.xlu1 %325 }
 0x36c   : > { %v327_v55 = vsub.f32 %v323_v37, %v326_v54 }
 0x36e   : > { %v328_v56 = vmul.f32 1.442695, %v327_v55 }
 0x370   : > { %793 = vpow2.f32 %v328_v56 }
 0x373   : > { %v437_v57 = vpop.xlane.xlu0 %436 }
 0x374   : > { %v438_v58 = vsub.f32 %v434_v43, %v437_v57 }
 0x376   : > { %v439_v59 = vmul.f32 1.442695, %v438_v58 }
 0x378   : > { %795 = vpow2.f32 %v439_v59 }
 0x37b   : > { %v548_v60 = vpop.xlane.xlu1 %547 }
 0x37c   : > { %v549_v61 = vsub.f32 %v545_v49, %v548_v60 }
 0x37d   : > { %v794_v62 = vpop.eup %793 }
 0x37e   : > { %v550_v63 = vmul.f32 1.442695, %v549_v61  ;;  %v330_v1 = vsel %vm209_vm2, %v794_v62, 0.0 }
 0x37f   : > { %331 = vadd.xlane.f32.xlu0 %v330_v1  ;;  %v337_v3 = vpop.permute.xlu1 %336 }
 0x380   : > { %797 = vpow2.f32 %v550_v63  ;;  %v342_v4 = vsel %vm228_vm3, %v337_v3, 0 }
 0x381   : > { %743 = vmatpush3.bf16.msra.mxu0 %v342_v4 }
 0x382   : > { %754 = vmatprep.subr.bf16.mxu0 %v813_v0 }
 0x385   : > { %v796_v5 = vpop.eup %795 }
 0x386   : > { %v441_v6 = vsel %vm209_vm2, %v796_v5, 0.0 }
 0x387   : > { %442 = vadd.xlane.f32.xlu1 %v441_v6 }
 0x38d   : > { %v798_v7 = vpop.eup %797 }
 0x38e   : > { %v552_v8 = vsel %vm209_vm2, %v798_v7, 0.0 }
 0x38f   : > { %553 = vadd.xlane.f32.xlu0 %v552_v8 }
 0x398   : > { %558 = vrot.lane.b32.xlu1 %v857_v2, %s820_s23 }
 0x3a5   : > { %447 = vrot.lane.b32.xlu0 %v857_v2, %s821_s24 }
 0x408   : > { %v332_v9 = vpop.xlane.xlu0 %331 }
 0x409   : > { %799 = vrcp.f32 %v332_v9 }
 0x410   : > { %v443_v10 = vpop.xlane.xlu1 %442 }
 0x411   : > { %801 = vrcp.f32 %v443_v10 }
 0x414   : > { %v559_v2 = vpop.permute.xlu1 %558 }
 0x415   : > { %v564_v20 = vsel %vm228_vm3, %v559_v2, 0 }
 0x416   : > { %v800_v11 = vpop.eup %799 }
 0x417   : > { %v334_v12 = vmul.f32 %v800_v11, %v794_v62 }
 0x418   : > { %v554_v13 = vpop.xlane.xlu0 %553 }
 0x419   : > { %803 = vrcp.f32 %v554_v13  ;;  %v335_v14 = vpack.c.bf16 %v334_v12, %v334_v12 }
 0x41b   : > { %745 = vmatmul.mubr.msk.bf16.vlgmr.msra.gmra.mxu0 %vm209_vm2, %v335_v14 }
 0x41c   : > { %v448_v15 = vpop.permute.xlu0 %447  ;;  %756 = vmatprep.mubr.msk.bf16.mxu0 %vm814_vm0, %v813_v0 }
 0x41d   : > { %v453_v16 = vsel %vm228_vm3, %v448_v15, 0 }
 0x41e   : > { %v802_v17 = vpop.eup %801  ;;  %755 = vmatpush3.bf16.msra.mxu0 %v453_v16 }
 0x41f   : > { %v445_v18 = vmul.f32 %v802_v17, %v796_v5  ;;  %766 = vmatprep.subr.bf16.mxu0 %v813_v0 }
 0x421   : > { %v446_v19 = vpack.c.bf16 %v445_v18, %v445_v18 }
 0x423   : > { %757 = vmatmul.mubr.msk.bf16.vlgmr.msra.gmra.mxu0 %vm209_vm2, %v446_v19 }
 0x424   : > { %767 = vmatpush3.bf16.msra.mxu0 %v564_v20  ;;  %768 = vmatprep.mubr.msk.bf16.mxu0 %vm814_vm0, %v813_v0 }
 0x426   : > { %v804_v21 = vpop.eup %803 }
 0x427   : > { %v556_v22 = vmul.f32 %v804_v21, %v798_v7 }
 0x429   : > { %v557_v23 = vpack.c.bf16 %v556_v22, %v556_v22 }
 0x42b   : > { %769 = vmatmul.mubr.msk.bf16.vlgmr.msra.gmra.mxu0 %vm209_vm2, %v557_v23 }
 0x4db   : > { %v378_v24 = vpop.f32.mrf.mxu0 }
 0x4dc   : > { %607 = vrot.lane.b32.xlu1 %v378_v24, %s820_s23 }
 0x4dd   : > { %v746_v25 = vpop.f32.mrf.mxu0 }
 0x4df   : > { %v381_v26 = vpop.f32.mrf.mxu0 }
 0x4e1   : > { %v747_v27 = vpop.f32.mrf.mxu0 }
 0x4e3   : > { %v489_v28 = vpop.f32.mrf.mxu0 }
 0x4e4   : > { %611 = vrot.lane.b32.xlu0 %v489_v28, %s821_s24 }
 0x4e5   : > { %v758_v29 = vpop.f32.mrf.mxu0 }
 0x4e7   : > { %v492_v30 = vpop.f32.mrf.mxu0 }
 0x4e9   : > { %v759_v31 = vpop.f32.mrf.mxu0 }
 0x4eb   : > { %v600_v33 = vpop.f32.mrf.mxu0 }
 0x4ec   : > { %615 = vrot.lane.b32.xlu1 %v600_v33, %s819_s22 }
 0x4ed   : > { %v770_v0 = vpop.f32.mrf.mxu0 }
 0x4ef   : > { %v603_v34 = vpop.f32.mrf.mxu0 }
 0x4f1   : > { %v771_v35 = vpop.f32.mrf.mxu0 }
 0x54e   : > { %v608_v36 = vpop.permute.xlu1 %607 }
 0x54f   : > { %v618_v38 = vsel %vm161_vm1, %v892_v32, %v608_v36 }
 0x556   : > { %v612_v37 = vpop.permute.xlu0 %611 }
 0x557   : > { %v620_v39 = vsel %vm619_vm4, %v618_v38, %v612_v37 }
 0x55e   : > { %v616_v40 = vpop.permute.xlu1 %615 }
 0x55f   : > { %v622_v41 = vsel %vm621_vm5, %v620_v39, %v616_v40 }
 0x560   : > { %624 = vst.msk [vmem:[%s155_s27] sm:$0xff] %vm623_vm6, %v622_v41 }
 0x561 PF: > { %s12_s9 = sadd.s32 1, %s811_s9  }
 0x562   : > { %p9_p4 = scmp.ge.s32.totalorder %s12_s9, 4  }
 0x564   :  { %11 = sbr.rel (!%p9_p4) target bundleno = 1 (0x1), region = 61 }

// kernel: cross_attention_gpt2_forward.41
= control target key start
LH: loop header
LB: loop body
LE: loop exit
PB: predicated region body
PF: predicated region fallthrough
CT: control target
= control target key end

     0   :  { %vm21_vm0 = vcmask 523264   ;;  %s283_s0 = inlined_call_operand.vmem [shape: f32[16,64], index: 0, kind: input, shape index: {}]   ;;  %s284_s1 = inlined_call_operand.vmem [shape: f32[1,64], index: 1, kind: input, shape index: {}]   ;;  %s285_s2 = inlined_call_operand.vmem [shape: f32[1,64], index: 2, kind: input, shape index: {}]   ;;  %s286_s3 = inlined_call_operand.vmem [shape: bf16[64,128], index: 3, kind: input, shape index: {}]   ;;  %s287_s4 = inlined_call_operand.hbm [shape: f32[16,128], index: 4, kind: output, shape index: {}]  }
   0x1   :  { %v19_v0 = vld [vmem:[%s283_s0] sm:$0xff]  ;;  %v20_v1 = vld [vmem:[%s283_s0 + $0x8] sm:$0xff] }
   0x2   :  { %v22_v2 = vsel %vm21_vm0, %v19_v0, 0.0  ;;  %v25_v3 = vsel %vm21_vm0, %v20_v1, 0.0 }
   0x3   :  { %23 = vadd.xlane.f32.xlu0 %v22_v2 }
   0x4   :  { %9 = vsyncpa [#allocation3], 0  ;;  %v191_v14 = vld [vmem:[%s286_s3 + $0x18] sm:$0xff]   ;;  %v221_v15 = vmov 0.0   ;;  %vm222_vm1 = vmmov 0   ;;  %v192_v16 = vld [vmem:[%s286_s3 + $0x10] sm:$0xff]  }
   0x5   :  { %174 = vmatprep.subr.bf16.mxu0 %v221_v15  ;;  %182 = vmatprep.mubr.msk.bf16.mxu0 %vm222_vm1, %v221_v15  ;;  %v193_v17 = vld [vmem:[%s286_s3 + $0x8] sm:$0xff]   ;;  %v194_v18 = vld [vmem:[%s286_s3] sm:$0xff]   ;;  %s223_s29 = smov [#allocation2]  }
   0x6   :  { %175 = vmatpush3.bf16.msra.mxu0 %v191_v14  ;;  %v162_v27 = vld [vmem:[%s284_s1] ss:$0 sm:$0xff]  ;;  %s151_s30 = sshll.u32 %s223_s29, 4  ;;  %s152_s30 = int_to_ptr.vmem [resolvable:$true] %s151_s30 }
   0x7   :  { %26 = vadd.xlane.f32.xlu0 %v25_v3  ;;  %176 = vmatprep.subr.bf16.mxu0 %v221_v15  ;;  %v163_v31 = vld [vmem:[%s285_s2] ss:$0 sm:$0xff]  ;;  %s199_s1 = scalar_lea.vmem %s152_s30, 256  ;;  %p204_p1 = scmp.lt.s32.totalorder %s152_s30, %s152_s30 }
   0x8   :  { %p200_p0 = scmp.ne.s32.totalorder %s152_s30, %s199_s1  ;;  %p205_p2 = scmp.lt.s32.totalorder %s199_s1, %s199_s1 }
   0xa   :  { %177 = vmatpush3.bf16.msra.mxu0 %v192_v16  ;;  %p206_p3 = por %p205_p2, %p204_p1 }
   0xb   :  { %178 = vmatprep.subr.bf16.mxu0 %v221_v15 }
   0xc   :  { %p207_p4 = pnand %p206_p3, %p200_p0 }
   0xe   :  { %179 = vmatpush3.bf16.msra.mxu0 %v193_v17 }
   0xf   :  { %180 = vmatprep.subr.bf16.mxu0 %v221_v15 }
  0x12   :  { %181 = vmatpush3.bf16.msra.mxu0 %v194_v18 }
  0x8c   :  { %v24_v4 = vpop.xlane.xlu0 %23 }
  0x8d   :  { %v29_v5 = vmul.f32 0.015625, %v24_v4 }
  0x8f   :  { %v31_v6 = vsub.f32 %v19_v0, %v29_v5 }
  0x90   :  { %v27_v7 = vpop.xlane.xlu0 %26 }
  0x91   :  { %v30_v8 = vmul.f32 0.015625, %v27_v7  ;;  %v33_v9 = vmul.f32 %v31_v6, %v31_v6 }
  0x93   :  { %v32_v10 = vsub.f32 %v20_v1, %v30_v8  ;;  %v35_v11 = vsel %vm21_vm0, %v33_v9, 0.0 }
  0x94   :  { %36 = vadd.xlane.f32.xlu1 %v35_v11 }
  0x95   :  { %v34_v12 = vmul.f32 %v32_v10, %v32_v10 }
  0x97   :  { %v38_v13 = vsel %vm21_vm0, %v34_v12, 0.0 }
  0x98   :  { %39 = vadd.xlane.f32.xlu1 %v38_v13 }
 0x11d   :  { %v37_v19 = vpop.xlane.xlu1 %36 }
 0x11e   :  { %v41_v20 = vmul.f32 0.015625, %v37_v19 }
 0x120   :  { %v43_v21 = vadd.f32 1e-05, %v41_v20 }
 0x121   :  { %v40_v22 = vpop.xlane.xlu1 %39 }
 0x122   :  { %195 = vrsqrt.f32 %v43_v21  ;;  %v42_v23 = vmul.f32 0.015625, %v40_v22 }
 0x124   :  { %v44_v24 = vadd.f32 1e-05, %v42_v23 }
 0x126   :  { %197 = vrsqrt.f32 %v44_v24 }
 0x12f   :  { %v196_v25 = vpop.eup %195 }
 0x130   :  { %v47_v26 = vmul.f32 %v196_v25, %v31_v6 }
 0x132   :  { %v56_v30 = vmul.f32 %v162_v27, %v47_v26 }
 0x133   :  { %v198_v28 = vpop.eup %197 }
 0x134   :  { %v48_v29 = vmul.f32 %v198_v28, %v32_v10  ;;  %v65_v33 = vadd.f32 %v163_v31, %v56_v30 }
 0x136   :  { %v57_v32 = vmul.f32 %v162_v27, %v48_v29 }
 0x138   :  { %v66_v34 = vadd.f32 %v163_v31, %v57_v32 }
 0x13a   :  { %v67_v35 = vpack.c.bf16 %v66_v34, %v65_v33 }
 0x13c   :  { %183 = vmatmul.mubr.msk.bf16.vlgmr.msra.gmra.mxu0 %vm21_vm0, %v67_v35 }
 0x1fc   :  { %v137_v36 = vpop.f32.mrf.mxu0 }
 0x1fd   :  { %144 = vst [vmem:[#allocation2] sm:$0xff] %v137_v36 }
 0x1fe   :  { %v184_v37 = vpop.f32.mrf.mxu0 }
 0x200   :  { %v140_v38 = vpop.f32.mrf.mxu0 }
 0x201   :  { %145 = vst [vmem:[#allocation2 + $0x8] sm:$0xff] %v140_v38 }
 0x202   :  { %v185_v39 = vpop.f32.mrf.mxu0 }
 0x203   :  { %210 = shalt.err (!%p207_p4)
}
 0x204   :  { %s224_s2 = smov 128   ;;  %s225_s5 = smov 8  }
 0x205   :  { %157 = dma.vmem_to_hbm [thread:$0]  %s152_s30, 256, %s287_s4, [#allocation3], %s224_s2, %s224_s2, %s225_s5  }
 0x206   :  { %219 = dma.done.wait [#allocation3], 256  }
 0x207   :  { %220 = vsyncadd [#allocation3], 4294967040 }
 0x208   :  { %161 = vsyncpa [#allocation3], 1 }

// kernel: cross_attention_gpt2_forward.28
= control target key start
LH: loop header
LB: loop body
LE: loop exit
PB: predicated region body
PF: predicated region fallthrough
CT: control target
= control target key end

     0   :  { %vm29_vm0 = vcmask 523264   ;;  %v495_v15 = vmov 0   ;;  %v86_v56 = vlaneseq  ;;  %s649_s0 = inlined_call_operand.vmem [shape: f32[16,64], index: 0, kind: input, shape index: {}]   ;;  %s650_s3 = inlined_call_operand.vmem [shape: bf16[64,256], index: 3, kind: input, shape index: {}]   ;;  %s651_s1 = inlined_call_operand.vmem [shape: f32[1,64], index: 1, kind: input, shape index: {}]   ;;  %s652_s2 = inlined_call_operand.vmem [shape: f32[1,64], index: 2, kind: input, shape index: {}]   ;;  %s653_s5 = inlined_call_operand.vmem [shape: bf16[256,64], index: 5, kind: input, shape index: {}]   ;;  %s654_s4 = inlined_call_operand.vmem [shape: f32[1,256], index: 4, kind: input, shape index: {}]   ;;  %s655_s6 = inlined_call_operand.vmem [shape: f32[1,64], index: 6, kind: input, shape index: {}]   ;;  %s656_s7 = inlined_call_operand.vmem [shape: f32[16,64], index: 7, kind: output, shape index: {}]  }
   0x1   :  { %v539_v0 = vld [vmem:[%s649_s0] sm:$0xff]  ;;  %v544_v1 = vld [vmem:[%s649_s0 + $0x8] sm:$0xff]  ;;  %v455_v14 = vld [vmem:[%s650_s3 + $0x34] ss:$8 sps:$4 sm:$0xff]   ;;  %171 = vmatprep.mubr.bf16.mxu0 %v495_v15 }
   0x2   :  { %v30_v2 = vsel %vm29_vm0, %v539_v0, 0.0  ;;  %v33_v3 = vsel %vm29_vm0, %v544_v1, 0.0  ;;  %v457_v16 = vld [vmem:[%s650_s3 + $0x30] ss:$8 sps:$4 sm:$0xff]   ;;  %147 = vmatprep.subr.bf16.mxu0 %v455_v14  ;;  %v458_v17 = vld [vmem:[%s650_s3 + $0x24] ss:$8 sps:$4 sm:$0xff]  }
   0x3   :  { %31 = vadd.xlane.f32.xlu0 %v30_v2  ;;  %148 = vmatpush1.bf16.msra.mxu0 %v457_v16  ;;  %v460_v18 = vld [vmem:[%s650_s3 + $0x20] ss:$8 sps:$4 sm:$0xff]   ;;  %v461_v19 = vld [vmem:[%s650_s3 + $0x14] ss:$8 sps:$4 sm:$0xff]   ;;  %v463_v20 = vld [vmem:[%s650_s3 + $0x10] ss:$8 sps:$4 sm:$0xff]  }
   0x4   :  { %149 = vmatprep.subr.bf16.mxu0 %v458_v17  ;;  %v464_v21 = vld [vmem:[%s650_s3 + $0x4] ss:$8 sps:$4 sm:$0xff]   ;;  %v466_v22 = vld [vmem:[%s650_s3] ss:$8 sps:$4 sm:$0xff]   ;;  %v467_v40 = vld [vmem:[%s653_s5 + $0x78] sm:$0xff]   ;;  %v87_v57 = vshrl.u32 %v86_v56, 7 }
   0x5   :  { %v404_v31 = vld [vmem:[%s651_s1] ss:$0 sm:$0xff]  ;;  %v468_v41 = vld [vmem:[%s653_s5 + $0x38] sm:$0xff]   ;;  %432 = vmatprep.subr.bf16.mxu1 %v467_v40  ;;  %v469_v42 = vld [vmem:[%s653_s5 + $0x70] sm:$0xff]  }
   0x6   :  { %v405_v35 = vld [vmem:[%s652_s2] ss:$0 sm:$0xff]  ;;  %433 = vmatpush3.bf16.msra.mxu1 %v468_v41  ;;  %v470_v43 = vld [vmem:[%s653_s5 + $0x30] sm:$0xff]   ;;  %v471_v44 = vld [vmem:[%s653_s5 + $0x68] sm:$0xff]   ;;  %v88_v58 = vsub.s32 0, %v87_v57  ;;  %v92_v60 = vsub.s32 1, %v87_v57 }
   0x7   :  { %34 = vadd.xlane.f32.xlu0 %v33_v3  ;;  %150 = vmatpush1.bf16.msra.mxu0 %v460_v18  ;;  %v472_v45 = vld [vmem:[%s653_s5 + $0x28] sm:$0xff]   ;;  %v473_v46 = vld [vmem:[%s653_s5 + $0x60] sm:$0xff]   ;;  %v475_v48 = vld [vmem:[%s653_s5 + $0x58] sm:$0xff]  }
   0x8   :  { %151 = vmatprep.subr.bf16.mxu0 %v461_v19  ;;  %434 = vmatprep.subr.bf16.mxu1 %v469_v42  ;;  %v474_v47 = vld [vmem:[%s653_s5 + $0x20] sm:$0xff]   ;;  %v476_v49 = vld [vmem:[%s653_s5 + $0x18] sm:$0xff]   ;;  %v477_v50 = vld [vmem:[%s653_s5 + $0x50] sm:$0xff]  }
   0x9   :  { %v478_v51 = vld [vmem:[%s653_s5 + $0x10] sm:$0xff]   ;;  %v479_v52 = vld [vmem:[%s653_s5 + $0x48] sm:$0xff]   ;;  %v481_v54 = vld [vmem:[%s653_s5 + $0x40] sm:$0xff]  }
   0xa   :  { %435 = vmatpush3.bf16.msra.mxu1 %v470_v43  ;;  %v480_v53 = vld [vmem:[%s653_s5 + $0x8] sm:$0xff]   ;;  %v482_v55 = vld [vmem:[%s653_s5] sm:$0xff]  }
   0xb   :  { %152 = vmatpush1.bf16.msra.mxu0 %v463_v20  ;;  %436 = vmatprep.subr.bf16.mxu1 %v471_v44  ;;  %v84_v59 = vld [vmem:[%s654_s4] sm:$0x3] }
   0xc   :  { %153 = vmatprep.subr.bf16.mxu0 %v464_v21  ;;  %v89_v61 = vrot.slane %v84_v59, %v88_v58  ;;  %v93_v62 = vrot.slane %v84_v59, %v92_v60 }
   0xe   :  { %437 = vmatpush3.bf16.msra.mxu1 %v472_v45 }
   0xf   :  { %154 = vmatpush1.bf16.msra.mxu0 %v466_v22  ;;  %438 = vmatprep.subr.bf16.mxu1 %v473_v46 }
  0x12   :  { %439 = vmatpush3.bf16.msra.mxu1 %v474_v47 }
  0x13   :  { %440 = vmatprep.subr.bf16.mxu1 %v475_v48  ;;  %v415_v48 = vld [vmem:[%s655_s6] ss:$0 sm:$0xff] }
  0x16   :  { %441 = vmatpush3.bf16.msra.mxu1 %v476_v49 }
  0x17   :  { %442 = vmatprep.subr.bf16.mxu1 %v477_v50 }
  0x1a   :  { %443 = vmatpush3.bf16.msra.mxu1 %v478_v51 }
  0x1b   :  { %444 = vmatprep.subr.bf16.mxu1 %v479_v52 }
  0x1e   :  { %445 = vmatpush3.bf16.msra.mxu1 %v480_v53 }
  0x1f   :  { %446 = vmatprep.subr.bf16.mxu1 %v481_v54 }
  0x22   :  { %447 = vmatpush3.bf16.msra.mxu1 %v482_v55 }
  0x8c   :  { %v32_v4 = vpop.xlane.xlu0 %31 }
  0x8d   :  { %v37_v5 = vmul.f32 0.015625, %v32_v4 }
  0x8f   :  { %v39_v6 = vsub.f32 %v539_v0, %v37_v5 }
  0x90   :  { %v35_v7 = vpop.xlane.xlu0 %34 }
  0x91   :  { %v38_v8 = vmul.f32 0.015625, %v35_v7  ;;  %v41_v9 = vmul.f32 %v39_v6, %v39_v6 }
  0x93   :  { %v40_v10 = vsub.f32 %v544_v1, %v38_v8  ;;  %v43_v11 = vsel %vm29_vm0, %v41_v9, 0.0 }
  0x94   :  { %44 = vadd.xlane.f32.xlu1 %v43_v11 }
  0x95   :  { %v42_v12 = vmul.f32 %v40_v10, %v40_v10 }
  0x97   :  { %v46_v13 = vsel %vm29_vm0, %v42_v12, 0.0 }
  0x98   :  { %47 = vadd.xlane.f32.xlu1 %v46_v13 }
 0x11d   :  { %v45_v23 = vpop.xlane.xlu1 %44 }
 0x11e   :  { %v49_v24 = vmul.f32 0.015625, %v45_v23 }
 0x120   :  { %v51_v25 = vadd.f32 1e-05, %v49_v24 }
 0x121   :  { %v48_v26 = vpop.xlane.xlu1 %47 }
 0x122   :  { %483 = vrsqrt.f32 %v51_v25  ;;  %v50_v27 = vmul.f32 0.015625, %v48_v26 }
 0x124   :  { %v52_v28 = vadd.f32 1e-05, %v50_v27 }
 0x126   :  { %485 = vrsqrt.f32 %v52_v28 }
 0x12f   :  { %v484_v29 = vpop.eup %483 }
 0x130   :  { %v55_v30 = vmul.f32 %v484_v29, %v39_v6 }
 0x132   :  { %v64_v34 = vmul.f32 %v404_v31, %v55_v30 }
 0x133   :  { %v486_v32 = vpop.eup %485 }
 0x134   :  { %v56_v33 = vmul.f32 %v486_v32, %v40_v10  ;;  %v73_v37 = vadd.f32 %v405_v35, %v64_v34 }
 0x136   :  { %v65_v36 = vmul.f32 %v404_v31, %v56_v33 }
 0x138   :  { %v74_v38 = vadd.f32 %v405_v35, %v65_v36 }
 0x13a   :  { %v75_v39 = vpack.c.bf16 %v74_v38, %v73_v37 }
 0x13c   :  { %414 = vmatmul.mubr.msk.bf16.vlgmr.msra.gmra.mxu0 %vm29_vm0, %v75_v39 }
 0x1fc   :  { %v173_v63 = vpop.f32.mrf.mxu0 }
 0x1fd   :  { %v174_v2 = vadd.f32 %v173_v63, %v89_v61 }
 0x1fe   :  { %v175_v3 = vpop.f32.mrf.mxu0 }
 0x1ff   :  { %v186_v4 = vmul.f32 0.044715, %v174_v2  ;;  %v176_v5 = vadd.f32 %v175_v3, %v93_v62  ;;  %v182_v40 = vmul.f32 0.5, %v174_v2 }
 0x200   :  { %v177_v6 = vpop.f32.mrf.mxu0 }
 0x201   :  { %v190_v7 = vmul.f32 %v186_v4, %v174_v2  ;;  %v187_v8 = vmul.f32 0.044715, %v176_v5  ;;  %v178_v9 = vadd.f32 %v177_v6, %v89_v61  ;;  %v183_v37 = vmul.f32 0.5, %v176_v5 }
 0x202   :  { %v179_v10 = vpop.f32.mrf.mxu0 }
 0x203   :  { %v194_v11 = vmul.f32 %v190_v7, %v174_v2  ;;  %v188_v12 = vmul.f32 0.044715, %v178_v9  ;;  %v180_v13 = vadd.f32 %v179_v10, %v93_v62  ;;  %v191_v14 = vmul.f32 %v187_v8, %v176_v5 }
 0x204   :  { %v184_v35 = vmul.f32 0.5, %v178_v9 }
 0x205   :  { %v192_v15 = vmul.f32 %v188_v12, %v178_v9  ;;  %v189_v16 = vmul.f32 0.044715, %v180_v13  ;;  %v195_v17 = vmul.f32 %v191_v14, %v176_v5  ;;  %v198_v18 = vadd.f32 %v194_v11, %v174_v2 }
 0x206   :  { %v185_v38 = vmul.f32 0.5, %v180_v13 }
 0x207   :  { %v196_v19 = vmul.f32 %v192_v15, %v178_v9  ;;  %v193_v20 = vmul.f32 %v189_v16, %v180_v13  ;;  %v199_v21 = vadd.f32 %v195_v17, %v176_v5  ;;  %v202_v22 = vmul.f32 0.7978846, %v198_v18 }
 0x209   :  { %v197_v23 = vmul.f32 %v193_v20, %v180_v13  ;;  %v203_v24 = vmul.f32 0.7978846, %v199_v21  ;;  %v200_v25 = vadd.f32 %v196_v19, %v178_v9 }
 0x20b   :  { %v201_v26 = vadd.f32 %v197_v23, %v180_v13  ;;  %487 = vtanh.f32 %v203_v24  ;;  %v204_v27 = vmul.f32 0.7978846, %v200_v25 }
 0x20c   :  { %489 = vtanh.f32 %v202_v22 }
 0x20d   :  { %v205_v28 = vmul.f32 0.7978846, %v201_v26  ;;  %491 = vtanh.f32 %v204_v27 }
 0x20f   :  { %493 = vtanh.f32 %v205_v28 }
 0x218   :  { %v488_v29 = vpop.eup %487 }
 0x219   :  { %v490_v30 = vpop.eup %489  ;;  %v211_v32 = vadd.f32 1.0, %v488_v29 }
 0x21a   :  { %v492_v31 = vpop.eup %491  ;;  %v210_v36 = vadd.f32 1.0, %v490_v30 }
 0x21b   :  { %v212_v33 = vadd.f32 1.0, %v492_v31  ;;  %v215_v42 = vmul.f32 %v211_v32, %v183_v37 }
 0x21c   :  { %v494_v34 = vpop.eup %493  ;;  %v214_v44 = vmul.f32 %v210_v36, %v182_v40 }
 0x21d   :  { %v213_v39 = vadd.f32 1.0, %v494_v34  ;;  %v216_v41 = vmul.f32 %v212_v33, %v184_v35 }
 0x21f   :  { %v217_v43 = vmul.f32 %v213_v39, %v185_v38  ;;  %v218_v46 = vpack.c.bf16 %v216_v41, %v214_v44 }
 0x221   :  { %v219_v45 = vpack.c.bf16 %v217_v43, %v215_v42 }
 0x223   :  { %387 = vmatprep.mubr.bf16.mxu1 %v219_v45 }
 0x224   :  { %388 = vmatmul.mubr.bf16.vlgmr.msra.gmra.mxu1 %v218_v46 }
 0x2e4   :  { %v448_v47 = vpop.f32.mrf.mxu1 }
 0x2e6   :  { %v449_v49 = vpop.f32.mrf.mxu1 }
 0x2e7   :  { %v450_v50 = vadd.f32 %v449_v49, %v448_v47 }
 0x2e8   :  { %v451_v51 = vpop.f32.mrf.mxu1 }
 0x2e9   :  { %v390_v52 = vadd.f32 %v450_v50, %v415_v48 }
 0x2ea   :  { %v452_v53 = vpop.f32.mrf.mxu1 }
 0x2eb   :  { %v396_v54 = vadd.f32 %v390_v52, %v539_v0  ;;  %v453_v55 = vadd.f32 %v452_v53, %v451_v51 }
 0x2ed   :  { %398 = vst.msk [vmem:[%s656_s7] sm:$0xff] %vm29_vm0, %v396_v54  ;;  %v393_v56 = vadd.f32 %v453_v55, %v415_v48 }
 0x2ef   :  { %v397_v57 = vadd.f32 %v393_v56, %v544_v1 }
 0x2f1   :  { %399 = vst.msk [vmem:[%s656_s7 + $0x8] sm:$0xff] %vm29_vm0, %v397_v57 }

</bundles_post_ra>
